<compile_context>
chip_gen: v5e
topology: v5e:2x2
jax: 0.10.0
libtpu: 0.0.40
codegen_flags: <defaults>
</compile_context>

<pallas_src>
import functools

import jax
import jax.numpy as jnp
from jax.experimental import pallas as pl
from jax.experimental.pallas import tpu as pltpu

# Lane-dense padded output width (final store / output DMA width).
_OUT_LANES = 128

# Consolidated bias layout: (start, end) lane offsets, segment starts 128-aligned.
_B1 = (0, 256)      # fc1+bn1 bias (256)
_B2 = (256, 384)    # fc2+bn2 bias (128)
_B3 = (384, 448)    # fc3+bn3 bias (64), segment padded to [384, 512)
_BH = (512, 576)    # fused [value|adv] hidden bias (64), segment padded to [512, 640)
_BO = (640, 768)    # fused head output bias, padded to 128 lanes
_BIAS_LANES = 768


def _round_up(n, m):
    return ((n + m - 1) // m) * m


def _dqn_kernel(x_ref, w1_ref, w2_ref, w3_ref, wh_ref, wo_ref, bias_ref, q_ref):
    def lin(a, w_ref, seg):
        w = w_ref[...]
        # Cast the activation operand to the weight dtype (f32 or bf16) so the
        # dot hits a single MXU datapath; accumulate in f32.
        out = jnp.dot(a.astype(w.dtype), w, preferred_element_type=jnp.float32)
        return out + bias_ref[:, seg[0]:seg[1]]

    h = jnp.maximum(lin(x_ref[...], w1_ref, _B1), 0.0)   # fc1 + bn1 (folded) -> relu
    h = jnp.maximum(lin(h, w2_ref, _B2), 0.0)            # fc2 + bn2 (folded) -> relu
    h = jnp.maximum(lin(h, w3_ref, _B3), 0.0)            # fc3 + bn3 (folded) -> relu
    h = jnp.maximum(lin(h, wh_ref, _BH), 0.0)            # fused [value|adv] hidden -> relu
    # Fused head + dueling combine, lane-dense (tb, 128) store.
    q_ref[...] = lin(h, wo_ref, _BO)


def fold_params(params, eps=1e-5, weight_dtype=jnp.float32):
    """One-time parameter prep: fold BN into Linear, fuse dueling heads,
    fold the dueling combine into the last matmul, pad output to 128 lanes,
    and pack all biases into a single lane-aligned vector.

    Set weight_dtype=jnp.bfloat16 on v6e/v7x to use the native bf16 MXU path
    (the kernel casts activations to match); loosen validation tolerance then.
    """

    def fold(w, b, g, beta, m, v):
        scale = g / jnp.sqrt(v + eps)           # (n,)
        shift = beta - m * scale                # (n,)
        w_f = (w * scale[None, :]).astype(weight_dtype)
        b_f = (b * scale + shift).astype(jnp.float32)
        return w_f, b_f

    fw1, fb1 = fold(params["w1"], params["b1"],
                    params["bn1_g"], params["bn1_b"], params["bn1_m"], params["bn1_v"])
    fw2, fb2 = fold(params["w2"], params["b2"],
                    params["bn2_g"], params["bn2_b"], params["bn2_m"], params["bn2_v"])
    fw3, fb3 = fold(params["w3"], params["b3"],
                    params["bn3_g"], params["bn3_b"], params["bn3_m"], params["bn3_v"])

    # Fused head layer 1: (64, 32) || (64, 32) -> (64, 64)
    wh = jnp.concatenate([params["wv1"], params["wa1"]], axis=1).astype(weight_dtype)
    bh = jnp.concatenate([params["bv1"], params["ba1"]]).astype(jnp.float32)

    # Fused head layer 2: block-diagonal (64, 1 + out_dim)  ->  head = [value, adv...]
    out_dim = params["wa2"].shape[1]
    h1 = params["wv2"].shape[0]                 # 32
    wo_bd = jnp.zeros((2 * h1, 1 + out_dim), jnp.float32)
    wo_bd = wo_bd.at[:h1, :1].set(params["wv2"])
    wo_bd = wo_bd.at[h1:, 1:].set(params["wa2"])
    bo_bd = jnp.concatenate([params["bv2"], params["ba2"]]).astype(jnp.float32)

    # Fold the dueling combine q = value + adv - mean(adv) into the matmul:
    # q = head @ C, with C[0,:] = 1 and C[1+k, j] = delta_kj - 1/out_dim.
    comb = jnp.zeros((1 + out_dim, out_dim), jnp.float32)
    comb = comb.at[0, :].set(1.0)
    comb = comb.at[1:, :].set(jnp.eye(out_dim, dtype=jnp.float32) - 1.0 / out_dim)
    wo = wo_bd @ comb                           # (64, out_dim), f32
    bo = bo_bd @ comb                           # (out_dim,),    f32

    # Pad to 128 lanes (zero columns) for an unmasked, lane-dense output store.
    wo = jnp.pad(wo, ((0, 0), (0, _OUT_LANES - out_dim))).astype(weight_dtype)
    bo = jnp.pad(bo, (0, _OUT_LANES - out_dim)).astype(jnp.float32)

    # Single consolidated bias vector (all segment starts are 128-aligned).
    bias = jnp.zeros((1, _BIAS_LANES), jnp.float32)
    bias = bias.at[0, _B1[0]:_B1[1]].set(fb1)
    bias = bias.at[0, _B2[0]:_B2[1]].set(fb2)
    bias = bias.at[0, _B3[0]:_B3[1]].set(fb3)
    bias = bias.at[0, _BH[0]:_BH[1]].set(bh)
    bias = bias.at[0, _BO[0]:_BO[1]].set(bo)

    return {"w1": fw1, "w2": fw2, "w3": fw3, "wh": wh, "wo": wo, "bias": bias}


@functools.partial(jax.jit, static_argnames=("out_dim", "block_batch"))
def trade_dqn_forward(x, fused, *, out_dim=3, block_batch=1024):
    """x: (B, input_dim) float32.  fused: output of fold_params."""
    B, in_dim = x.shape

    # Batch tile: one grid step when B fits (grid steps are a serial loop on
    # v5e/v6e); larger batches tile and mark the axis "parallel" for v7x.
    tb = min(block_batch, _round_up(B, 8))
    b_pad = _round_up(B, tb)
    if b_pad != B:
        x = jnp.pad(x, ((0, b_pad - B), (0, 0)))
    n_blocks = pl.cdiv(b_pad, tb)

    weight_args = (fused["w1"], fused["w2"], fused["w3"],
                   fused["wh"], fused["wo"], fused["bias"])

    def const_spec(arr):
        # Constant block index: DMA'd once, VMEM-resident across the grid.
        return pl.BlockSpec(arr.shape, lambda i: (0,) * arr.ndim)

    q = pl.pallas_call(
        _dqn_kernel,
        out_shape=jax.ShapeDtypeStruct((b_pad, _OUT_LANES), jnp.float32),
        grid=(n_blocks,),
        in_specs=[pl.BlockSpec((tb, in_dim), lambda i: (i, 0))]
        + [const_spec(a) for a in weight_args],
        out_specs=pl.BlockSpec((tb, _OUT_LANES), lambda i: (i, 0)),
        compiler_params=pltpu.CompilerParams(
            dimension_semantics=("parallel",)),
    )(x, *weight_args)

    # Drop padded batch rows and the zero-padded output lanes.
    return q[:B, :out_dim]


def init_params(key, input_dim, output_dim=3):
    """Deterministic synthetic parameters (PyTorch Linear shapes, transposed)."""
    ks = jax.random.split(key, 16)

    def lin(k, fan_in, fan_out):
        kw, kb = jax.random.split(k)
        bound = 1.0 / jnp.sqrt(fan_in)
        w = jax.random.uniform(kw, (fan_in, fan_out), jnp.float32, -bound, bound)
        b = jax.random.uniform(kb, (fan_out,), jnp.float32, -bound, bound)
        return w, b

    p = {}
    p["w1"], p["b1"] = lin(ks[0], input_dim, 256)
    p["w2"], p["b2"] = lin(ks[1], 256, 128)
    p["w3"], p["b3"] = lin(ks[2], 128, 64)
    p["wv1"], p["bv1"] = lin(ks[3], 64, 32)
    p["wv2"], p["bv2"] = lin(ks[4], 32, 1)
    p["wa1"], p["ba1"] = lin(ks[5], 64, 32)
    p["wa2"], p["ba2"] = lin(ks[6], 32, output_dim)

    # BatchNorm params: non-trivial but deterministic running stats (eval mode).
    for i, (k, n) in enumerate(zip(ks[7:10], (256, 128, 64)), start=1):
        km, kv, kg, kb = jax.random.split(k, 4)
        p[f"bn{i}_g"] = 1.0 + 0.1 * jax.random.normal(kg, (n,), jnp.float32)
        p[f"bn{i}_b"] = 0.1 * jax.random.normal(kb, (n,), jnp.float32)
        p[f"bn{i}_m"] = 0.05 * jax.random.normal(km, (n,), jnp.float32)
        p[f"bn{i}_v"] = 1.0 + 0.1 * jax.random.uniform(kv, (n,), jnp.float32)
    return p


def _reference(x, params, eps=1e-5):
    """Pure-JAX reference of the PyTorch eval-mode forward."""
    def bn(h, i):
        g, b = params[f"bn{i}_g"], params[f"bn{i}_b"]
        m, v = params[f"bn{i}_m"], params[f"bn{i}_v"]
        return (h - m) / jnp.sqrt(v + eps) * g + b

    h = jax.nn.relu(bn(x @ params["w1"] + params["b1"], 1))
    h = jax.nn.relu(bn(h @ params["w2"] + params["b2"], 2))
    h = jax.nn.relu(bn(h @ params["w3"] + params["b3"], 3))
    value = jax.nn.relu(h @ params["wv1"] + params["bv1"]) @ params["wv2"] + params["bv2"]
    adv = jax.nn.relu(h @ params["wa1"] + params["ba1"]) @ params["wa2"] + params["ba2"]
    return value + adv - adv.mean(axis=1, keepdims=True)


if __name__ == "__main__":
    key = jax.random.PRNGKey(0)
    k_param, k_x = jax.random.split(key)

    batch, input_dim, output_dim = 256, 32, 3
    params = init_params(k_param, input_dim, output_dim)
    fused = fold_params(params)          # one-time BN fold + head/combine fusion

    x = jax.random.normal(k_x, (batch, input_dim), jnp.float32)

    # Single grid step (tb = 256) -- weights VMEM-resident, one lane-dense store.
    q = trade_dqn_forward(x, fused, out_dim=output_dim)
    q = jax.block_until_ready(q)

    q_ref = _reference(x, params)
    assert q.shape == (batch, output_dim)
    assert jnp.allclose(q, q_ref, atol=1e-4, rtol=1e-4), "mismatch vs JAX reference"

    # Also exercise padding + multi-step grid path (B=9 -> tb=8, 2 grid steps).
    x_small = jax.random.normal(k_x, (9, input_dim), jnp.float32)
    q_small = jax.block_until_ready(
        trade_dqn_forward(x_small, fused, out_dim=output_dim, block_batch=8))
    assert q_small.shape == (9, output_dim)
    assert jnp.allclose(q_small, _reference(x_small, params), atol=1e-4, rtol=1e-4)

    # TODO(synk): training-mode Dropout / BatchNorm batch-stat updates are not
    # implemented (kernel is eval-mode only, matching module.eval()).

    print("KERNEL_OK")
</pallas_src>

<mosaic_0001>
module attributes {stable_mosaic.version = 11 : i64} {
  func.func @_dqn_kernel(%arg0: i32, %arg1: memref<256x32xf32, #tpu.memory_space<vmem>>, %arg2: memref<32x256xf32, #tpu.memory_space<vmem>>, %arg3: memref<256x128xf32, #tpu.memory_space<vmem>>, %arg4: memref<128x64xf32, #tpu.memory_space<vmem>>, %arg5: memref<64x64xf32, #tpu.memory_space<vmem>>, %arg6: memref<64x128xf32, #tpu.memory_space<vmem>>, %arg7: memref<1x768xf32, #tpu.memory_space<vmem>>, %arg8: memref<256x128xf32, #tpu.memory_space<vmem>>) attributes {dimension_semantics = [#tpu.dimension_semantics<parallel>], iteration_bounds = array<i64: 1>, scalar_prefetch = 0 : i64, scratch_operands = 0 : i64, tpu.core_type = #tpu.core_type<tc>, window_params = [{transform_indices = @transform_0, window_bounds = array<i64: 256, 32>}, {pipeline_mode = #tpu.pipeline_mode<synchronous>, transform_indices = @transform_1, window_bounds = array<i64: 32, 256>}, {pipeline_mode = #tpu.pipeline_mode<synchronous>, transform_indices = @transform_2, window_bounds = array<i64: 256, 128>}, {pipeline_mode = #tpu.pipeline_mode<synchronous>, transform_indices = @transform_3, window_bounds = array<i64: 128, 64>}, {pipeline_mode = #tpu.pipeline_mode<synchronous>, transform_indices = @transform_4, window_bounds = array<i64: 64, 64>}, {pipeline_mode = #tpu.pipeline_mode<synchronous>, transform_indices = @transform_5, window_bounds = array<i64: 64, 128>}, {pipeline_mode = #tpu.pipeline_mode<synchronous>, transform_indices = @transform_6, window_bounds = array<i64: 1, 768>}, {transform_indices = @transform_7, window_bounds = array<i64: 256, 128>}]} {
    %c0 = arith.constant 0 : index
    %c0_0 = arith.constant 0 : index
    %0 = vector.load %arg1[%c0, %c0_0] : memref<256x32xf32, #tpu.memory_space<vmem>>, vector<256x32xf32>
    %c0_1 = arith.constant 0 : index
    %c0_2 = arith.constant 0 : index
    %1 = vector.load %arg2[%c0_1, %c0_2] : memref<32x256xf32, #tpu.memory_space<vmem>>, vector<32x256xf32>
    %cst = arith.constant dense<0.000000e+00> : vector<256x256xf32>
    %2 = tpu.matmul %0, %1, %cst {dimension_numbers = #tpu.dot_dimension_numbers<[1], [0], [0], [1], [0, 0, 1, 1], [], []>} : vector<256x32xf32>, vector<32x256xf32>, vector<256x256xf32> -> vector<256x256xf32>
    %c0_3 = arith.constant 0 : index
    %c0_4 = arith.constant 0 : index
    %3 = vector.load %arg7[%c0_3, %c0_4] : memref<1x768xf32, #tpu.memory_space<vmem>>, vector<1x256xf32>
    %4 = vector.broadcast %3 : vector<1x256xf32> to vector<256x256xf32>
    %5 = arith.addf %2, %4 : vector<256x256xf32>
    %cst_5 = arith.constant 0.000000e+00 : f32
    %6 = vector.broadcast %cst_5 : f32 to vector<256x256xf32>
    %7 = arith.maximumf %5, %6 : vector<256x256xf32>
    %c0_6 = arith.constant 0 : index
    %c0_7 = arith.constant 0 : index
    %8 = vector.load %arg3[%c0_6, %c0_7] : memref<256x128xf32, #tpu.memory_space<vmem>>, vector<256x128xf32>
    %cst_8 = arith.constant dense<0.000000e+00> : vector<256x128xf32>
    %9 = tpu.matmul %7, %8, %cst_8 {dimension_numbers = #tpu.dot_dimension_numbers<[1], [0], [0], [1], [0, 0, 1, 1], [], []>} : vector<256x256xf32>, vector<256x128xf32>, vector<256x128xf32> -> vector<256x128xf32>
    %c0_9 = arith.constant 0 : index
    %c256 = arith.constant 256 : index
    %10 = vector.load %arg7[%c0_9, %c256] : memref<1x768xf32, #tpu.memory_space<vmem>>, vector<1x128xf32>
    %11 = vector.broadcast %10 : vector<1x128xf32> to vector<256x128xf32>
    %12 = arith.addf %9, %11 : vector<256x128xf32>
    %cst_10 = arith.constant 0.000000e+00 : f32
    %13 = vector.broadcast %cst_10 : f32 to vector<256x128xf32>
    %14 = arith.maximumf %12, %13 : vector<256x128xf32>
    %c0_11 = arith.constant 0 : index
    %c0_12 = arith.constant 0 : index
    %15 = vector.load %arg4[%c0_11, %c0_12] : memref<128x64xf32, #tpu.memory_space<vmem>>, vector<128x64xf32>
    %cst_13 = arith.constant dense<0.000000e+00> : vector<256x64xf32>
    %16 = tpu.matmul %14, %15, %cst_13 {dimension_numbers = #tpu.dot_dimension_numbers<[1], [0], [0], [1], [0, 0, 1, 1], [], []>} : vector<256x128xf32>, vector<128x64xf32>, vector<256x64xf32> -> vector<256x64xf32>
    %c0_14 = arith.constant 0 : index
    %c384 = arith.constant 384 : index
    %17 = vector.load %arg7[%c0_14, %c384] : memref<1x768xf32, #tpu.memory_space<vmem>>, vector<1x64xf32>
    %18 = vector.broadcast %17 : vector<1x64xf32> to vector<256x64xf32>
    %19 = arith.addf %16, %18 : vector<256x64xf32>
    %cst_15 = arith.constant 0.000000e+00 : f32
    %20 = vector.broadcast %cst_15 : f32 to vector<256x64xf32>
    %21 = arith.maximumf %19, %20 : vector<256x64xf32>
    %c0_16 = arith.constant 0 : index
    %c0_17 = arith.constant 0 : index
    %22 = vector.load %arg5[%c0_16, %c0_17] : memref<64x64xf32, #tpu.memory_space<vmem>>, vector<64x64xf32>
    %cst_18 = arith.constant dense<0.000000e+00> : vector<256x64xf32>
    %23 = tpu.matmul %21, %22, %cst_18 {dimension_numbers = #tpu.dot_dimension_numbers<[1], [0], [0], [1], [0, 0, 1, 1], [], []>} : vector<256x64xf32>, vector<64x64xf32>, vector<256x64xf32> -> vector<256x64xf32>
    %c0_19 = arith.constant 0 : index
    %c512 = arith.constant 512 : index
    %24 = vector.load %arg7[%c0_19, %c512] : memref<1x768xf32, #tpu.memory_space<vmem>>, vector<1x64xf32>
    %25 = vector.broadcast %24 : vector<1x64xf32> to vector<256x64xf32>
    %26 = arith.addf %23, %25 : vector<256x64xf32>
    %cst_20 = arith.constant 0.000000e+00 : f32
    %27 = vector.broadcast %cst_20 : f32 to vector<256x64xf32>
    %28 = arith.maximumf %26, %27 : vector<256x64xf32>
    %c0_21 = arith.constant 0 : index
    %c0_22 = arith.constant 0 : index
    %29 = vector.load %arg6[%c0_21, %c0_22] : memref<64x128xf32, #tpu.memory_space<vmem>>, vector<64x128xf32>
    %cst_23 = arith.constant dense<0.000000e+00> : vector<256x128xf32>
    %30 = tpu.matmul %28, %29, %cst_23 {dimension_numbers = #tpu.dot_dimension_numbers<[1], [0], [0], [1], [0, 0, 1, 1], [], []>} : vector<256x64xf32>, vector<64x128xf32>, vector<256x128xf32> -> vector<256x128xf32>
    %c0_24 = arith.constant 0 : index
    %c640 = arith.constant 640 : index
    %31 = vector.load %arg7[%c0_24, %c640] : memref<1x768xf32, #tpu.memory_space<vmem>>, vector<1x128xf32>
    %32 = vector.broadcast %31 : vector<1x128xf32> to vector<256x128xf32>
    %33 = arith.addf %30, %32 : vector<256x128xf32>
    %c0_25 = arith.constant 0 : index
    %c0_26 = arith.constant 0 : index
    %34 = vector.load %arg8[%c0_25, %c0_26] : memref<256x128xf32, #tpu.memory_space<vmem>>, vector<256x128xf32>
    tpu.vector_store %arg8[%c0_25, %c0_26], %33 {strides = array<i32>} : memref<256x128xf32, #tpu.memory_space<vmem>>, vector<256x128xf32>,
    return
  }
  func.func @transform_0(%arg0: i32) -> (i32, i32) {
    %c0_i32 = arith.constant 0 : i32
    %c0_i32_0 = arith.constant 0 : i32
    return %arg0, %c0_i32 : i32, i32
  }
  func.func @transform_1(%arg0: i32) -> (i32, i32) {
    %c0_i32 = arith.constant 0 : i32
    %c0_i32_0 = arith.constant 0 : i32
    %c0_i32_1 = arith.constant 0 : i32
    return %c0_i32, %c0_i32_0 : i32, i32
  }
  func.func @transform_2(%arg0: i32) -> (i32, i32) {
    %c0_i32 = arith.constant 0 : i32
    %c0_i32_0 = arith.constant 0 : i32
    %c0_i32_1 = arith.constant 0 : i32
    return %c0_i32, %c0_i32_0 : i32, i32
  }
  func.func @transform_3(%arg0: i32) -> (i32, i32) {
    %c0_i32 = arith.constant 0 : i32
    %c0_i32_0 = arith.constant 0 : i32
    %c0_i32_1 = arith.constant 0 : i32
    return %c0_i32, %c0_i32_0 : i32, i32
  }
  func.func @transform_4(%arg0: i32) -> (i32, i32) {
    %c0_i32 = arith.constant 0 : i32
    %c0_i32_0 = arith.constant 0 : i32
    %c0_i32_1 = arith.constant 0 : i32
    return %c0_i32, %c0_i32_0 : i32, i32
  }
  func.func @transform_5(%arg0: i32) -> (i32, i32) {
    %c0_i32 = arith.constant 0 : i32
    %c0_i32_0 = arith.constant 0 : i32
    %c0_i32_1 = arith.constant 0 : i32
    return %c0_i32, %c0_i32_0 : i32, i32
  }
  func.func @transform_6(%arg0: i32) -> (i32, i32) {
    %c0_i32 = arith.constant 0 : i32
    %c0_i32_0 = arith.constant 0 : i32
    %c0_i32_1 = arith.constant 0 : i32
    return %c0_i32, %c0_i32_0 : i32, i32
  }
  func.func @transform_7(%arg0: i32) -> (i32, i32) {
    %c0_i32 = arith.constant 0 : i32
    %c0_i32_0 = arith.constant 0 : i32
    return %arg0, %c0_i32 : i32, i32
  }
}

</mosaic_0001>

<bundles_post_ra>
// kernel: trade_dqn_forward.1
= control target key start
LH: loop header
LB: loop body
LE: loop exit
PB: predicated region body
PF: predicated region fallthrough
CT: control target
= control target key end

     0   :  { %12 = vsyncpa [#allocation3], 0  ;;  %s1635_s27 = smov [#allocation2]   ;;  %s2663_s0 = inlined_call_operand.vmem [shape: f32[256,32], index: 0, kind: input, shape index: {}]   ;;  %s2664_s1 = inlined_call_operand.vmem [shape: f32[32,256], index: 1, kind: input, shape index: {}]   ;;  %s2665_s2 = inlined_call_operand.vmem [shape: f32[256,128], index: 2, kind: input, shape index: {}]   ;;  %s2666_s3 = inlined_call_operand.vmem [shape: f32[128,64], index: 3, kind: input, shape index: {}]   ;;  %s2667_s4 = inlined_call_operand.vmem [shape: f32[64,64], index: 4, kind: input, shape index: {}]   ;;  %s2668_s5 = inlined_call_operand.vmem [shape: f32[64,128], index: 5, kind: input, shape index: {}]   ;;  %s2669_s6 = inlined_call_operand.hbm [shape: f32[1,768], index: 6, kind: input, shape index: {}]   ;;  %s2670_s7 = inlined_call_operand.vmem [shape: f32[256,128], index: 7, kind: output, shape index: {}]  }
   0x1   :  { %s30_s26 = sshll.u32 %s2669_s6, 4  ;;  %s32_s28 = sshll.u32 %s1635_s27, 4  ;;  %s31_s26 = int_to_ptr.hbm [resolvable:$true] %s30_s26  ;;  %s33_s28 = int_to_ptr.vmem [resolvable:$true] %s32_s28 }
   0x2   :  { %35 = dma.hbm_to_vmem [thread:$0]  %s31_s26, 96, %s33_s28, [#allocation3]  }
   0x3   :  { %1633 = dma.done.wait [#allocation3], 96  }
   0x4   :  { %1634 = vsyncadd [#allocation3], 4294967200  ;;  %v78_v0 = vld [vmem:[%s2664_s1 + $0x30] sm:$0xff]  ;;  %v76_v1 = vld [vmem:[%s2664_s1 + $0x20] sm:$0xff]  ;;  %vm86_vm0 = vcmask 261120   ;;  %vm944_vm1 = vcmask 523264  }
   0x5   :  { %195 = vmatpush.msra.mxu0 %v78_v0  ;;  %1572 = vmatpush.msra.mxu3 %v78_v0  ;;  %v74_v2 = vld [vmem:[%s2664_s1 + $0x10] sm:$0xff]  ;;  %v72_v3 = vld [vmem:[%s2664_s1] sm:$0xff]  ;;  %v1701_v5 = vld [vmem:[%s2663_s0 + $0x8] sm:$0xff] }
   0x6   :  { %v1694_v4 = vld [vmem:[%s2663_s0] sm:$0xff]  ;;  %v1708_v6 = vld [vmem:[%s2663_s0 + $0x10] sm:$0xff]  ;;  %v1715_v7 = vld [vmem:[%s2663_s0 + $0x18] sm:$0xff] }
   0x7   :  { %196 = vmatpush.msra.mxu0 %v76_v1  ;;  %1573 = vmatpush.msra.mxu3 %v76_v1  ;;  %v1722_v8 = vld [vmem:[%s2663_s0 + $0x20] sm:$0xff]  ;;  %v1729_v9 = vld [vmem:[%s2663_s0 + $0x28] sm:$0xff]  ;;  %v1736_v10 = vld [vmem:[%s2663_s0 + $0x30] sm:$0xff] }
   0x8   :  { %v1743_v11 = vld [vmem:[%s2663_s0 + $0x38] sm:$0xff]  ;;  %v1750_v12 = vld [vmem:[%s2663_s0 + $0x40] sm:$0xff]  ;;  %v1762_v14 = vld [vmem:[%s2665_s2 + $0x70] sm:$0xff] }
   0x9   :  { %197 = vmatpush.msra.mxu0 %v74_v2  ;;  %1574 = vmatpush.msra.mxu3 %v74_v2  ;;  %v1757_v13 = vld [vmem:[%s2665_s2 + $0x78] sm:$0xff]  ;;  %v1768_v15 = vld [vmem:[%s2665_s2 + $0x68] sm:$0xff]  ;;  %v1782_v17 = vld [vmem:[%s2665_s2 + $0x60] sm:$0xff] }
   0xa   :  { %509 = vmatpush.msra.mxu2 %v1757_v13  ;;  %v1774_v16 = vld [vmem:[%s2663_s0 + $0x48] sm:$0xff]  ;;  %v1787_v18 = vld [vmem:[%s2665_s2 + $0x58] sm:$0xff]  ;;  %v1793_v19 = vld [vmem:[%s2665_s2 + $0x50] sm:$0xff] }
   0xb   :  { %198 = vmatpush.msra.mxu0 %v72_v3  ;;  %1575 = vmatpush.msra.mxu3 %v72_v3  ;;  %v1799_v20 = vld [vmem:[%s2665_s2 + $0x48] sm:$0xff]  ;;  %v1804_v21 = vld [vmem:[%s2663_s0 + $0x50] sm:$0xff]  ;;  %v1813_v22 = vld [vmem:[%s2665_s2 + $0x40] sm:$0xff] }
   0xc   :  { %1444 = vmatmul.msk.f32.vlgmr.msra.gmra.mxu0 %vm86_vm0, %v1694_v4  ;;  %510 = vmatpush.msra.mxu2 %v1762_v14  ;;  %v1818_v23 = vld [vmem:[%s2665_s2 + $0x38] sm:$0xff]  ;;  %v1824_v24 = vld [vmem:[%s2665_s2 + $0x30] sm:$0xff]  ;;  %v1830_v25 = vld [vmem:[%s2665_s2 + $0x28] sm:$0xff] }
   0xd   :  { %v1835_v26 = vld [vmem:[%s2663_s0 + $0x58] sm:$0xff]  ;;  %v1844_v27 = vld [vmem:[%s2665_s2 + $0x20] sm:$0xff]  ;;  %v1856_v29 = vld [vmem:[%s2665_s2 + $0x10] sm:$0xff] }
   0xe   :  { %511 = vmatpush.msra.mxu2 %v1768_v15  ;;  %v1849_v28 = vld [vmem:[%s2665_s2 + $0x18] sm:$0xff]  ;;  %v1861_v30 = vld [vmem:[%s2663_s0 + $0x60] sm:$0xff]  ;;  %v1867_v31 = vld [vmem:[%s2665_s2 + $0x8] sm:$0xff] }
   0xf   :  { %v1875_v32 = vld [vmem:[%s2665_s2] sm:$0xff]  ;;  %v1881_v33 = vld [vmem:[%s2663_s0 + $0x68] sm:$0xff]  ;;  %v1888_v34 = vld [vmem:[%s2663_s0 + $0x70] sm:$0xff] }
  0x10   :  { %512 = vmatpush.msra.mxu2 %v1782_v17  ;;  %v1895_v35 = vld [vmem:[%s2663_s0 + $0x78] sm:$0xff]  ;;  %v1897_v36 = vld [vmem:[#allocation2] sm:$0x3]  ;;  %v1915_v43 = vld [vmem:[%s2663_s0 + $0x88] sm:$0xff] }
  0x11   :  { %v1902_v37 = vperm.slane %v1897_v36, 0  ;;  %v1907_v39 = vld [vmem:[%s2663_s0 + $0x80] sm:$0xff]  ;;  %v1923_v47 = vld [vmem:[%s2663_s0 + $0x90] sm:$0xff]  ;;  %v1931_v51 = vld [vmem:[%s2663_s0 + $0x98] sm:$0xff] }
  0x12   :  { %513 = vmatpush.msra.mxu2 %v1787_v18  ;;  %v1939_v55 = vld [vmem:[%s2663_s0 + $0xa0] sm:$0xff]  ;;  %v1947_v58 = vld [vmem:[%s2663_s0 + $0xc8] sm:$0xff]  ;;  %v1960_v62 = vld [vmem:[%s2663_s0 + $0xd0] sm:$0xff] }
  0x13   :  { %1469 = vmatmul.msk.f32.vlgmr.msra.gmra.mxu3 %vm86_vm0, %v1947_v58  ;;  %v1954_v60 = vld [vmem:[%s2663_s0 + $0xa8] sm:$0xff]  ;;  %v79_v63 = vld [vmem:[%s2664_s1 + $0x38] sm:$0xff]  ;;  %v1972_v2 = vld [vmem:[%s2663_s0 + $0xb0] sm:$0xff] }
  0x14   :  { %1445 = vmatmul.msk.f32.gmra.mxu0 %vm86_vm0, %v1701_v5  ;;  %514 = vmatpush.msra.mxu2 %v1793_v19 }
  0x15   :  { %1576 = vmatpush.msrb.mxu3 %v79_v63  ;;  %308 = vmatpush.msra.mxu1 %v79_v63 }
  0x16   :  { %515 = vmatpush.msra.mxu2 %v1799_v20 }
  0x18   :  { %516 = vmatpush.msra.mxu2 %v1813_v22 }
  0x1a   :  { %517 = vmatpush.msra.mxu2 %v1818_v23 }
  0x1b   :  { %1470 = vmatmul.msk.f32.gmra.mxu3 %vm86_vm0, %v1960_v62 }
  0x1c   :  { %1446 = vmatmul.msk.f32.gmra.mxu0 %vm86_vm0, %v1708_v6  ;;  %518 = vmatpush.msra.mxu2 %v1824_v24 }
  0x1e   :  { %519 = vmatpush.msra.mxu2 %v1830_v25 }
  0x20   :  { %520 = vmatpush.msra.mxu2 %v1844_v27 }
  0x22   :  { %521 = vmatpush.msra.mxu2 %v1849_v28 }
  0x24   :  { %1447 = vmatmul.msk.f32.gmra.mxu0 %vm86_vm0, %v1715_v7  ;;  %522 = vmatpush.msra.mxu2 %v1856_v29 }
  0x26   :  { %523 = vmatpush.msra.mxu2 %v1867_v31 }
  0x28   :  { %524 = vmatpush.msra.mxu2 %v1875_v32 }
  0x2c   :  { %1448 = vmatmul.msk.f32.gmra.mxu0 %vm86_vm0, %v1722_v8 }
  0x34   :  { %1449 = vmatmul.msk.f32.gmra.mxu0 %vm86_vm0, %v1729_v9 }
  0x3c   :  { %1450 = vmatmul.msk.f32.gmra.mxu0 %vm86_vm0, %v1736_v10 }
  0x44   :  { %1451 = vmatmul.msk.f32.gmra.mxu0 %vm86_vm0, %v1743_v11 }
  0x4c   :  { %1452 = vmatmul.msk.f32.gmra.mxu0 %vm86_vm0, %v1750_v12 }
  0x54   :  { %1453 = vmatmul.msk.f32.gmra.mxu0 %vm86_vm0, %v1774_v16 }
  0x5c   :  { %1454 = vmatmul.msk.f32.gmra.mxu0 %vm86_vm0, %v1804_v21 }
  0x64   :  { %1455 = vmatmul.msk.f32.gmra.mxu0 %vm86_vm0, %v1835_v26 }
  0x6c   :  { %1456 = vmatmul.msk.f32.gmra.mxu0 %vm86_vm0, %v1861_v30 }
  0x74   :  { %1457 = vmatmul.msk.f32.gmra.mxu0 %vm86_vm0, %v1881_v33 }
  0x7c   :  { %1458 = vmatmul.msk.f32.gmra.mxu0 %vm86_vm0, %v1888_v34 }
  0x84   :  { %1459 = vmatmul.msk.f32.gmra.mxu0 %vm86_vm0, %v1895_v35 }
  0x89   :  { %v200_v38 = vpop.f32.mrf.mxu0 }
  0x8a   :  { %v201_v40 = vadd.f32 %v200_v38, %v1902_v37  ;;  %v1978_v38 = vld [vmem:[%s2663_s0 + $0xd8] sm:$0xff] }
  0x8b   :  { %1471 = vmatmul.msk.f32.gmra.mxu3 %vm86_vm0, %v1978_v38 }
  0x8c   :  { %1460 = vmatmul.msk.f32.gmra.mxu0 %vm86_vm0, %v1907_v39  ;;  %v409_v41 = vmax.f32 %v201_v40, 0.0 }
  0x8e   :  { %525 = vmatmul.f32.vlgmr.msra.gmra.mxu2 %v409_v41 }
  0x91   :  { %v203_v42 = vpop.f32.mrf.mxu0 }
  0x92   :  { %v204_v44 = vadd.f32 %v203_v42, %v1902_v37  ;;  %v1987_v42 = vld [vmem:[%s2663_s0 + $0xb8] sm:$0xff] }
  0x94   :  { %1461 = vmatmul.msk.f32.gmra.mxu0 %vm86_vm0, %v1915_v43  ;;  %v411_v45 = vmax.f32 %v204_v44, 0.0 }
  0x96   :  { %528 = vmatmul.f32.gmra.mxu2 %v411_v45  ;;  %v77_v45 = vld [vmem:[%s2664_s1 + $0x28] sm:$0xff] }
  0x97   :  { %1577 = vmatpush.msrb.mxu3 %v77_v45  ;;  %309 = vmatpush.msra.mxu1 %v77_v45 }
  0x99   :  { %v206_v46 = vpop.f32.mrf.mxu0 }
  0x9a   :  { %v207_v48 = vadd.f32 %v206_v46, %v1902_v37  ;;  %v1996_v46 = vld [vmem:[%s2663_s0 + $0xe0] sm:$0xff] }
  0x9b   :  { %1472 = vmatmul.msk.f32.gmra.mxu3 %vm86_vm0, %v1996_v46 }
  0x9c   :  { %1462 = vmatmul.msk.f32.gmra.mxu0 %vm86_vm0, %v1923_v47  ;;  %v413_v49 = vmax.f32 %v207_v48, 0.0 }
  0x9e   :  { %531 = vmatmul.f32.gmra.mxu2 %v413_v49 }
  0xa1   :  { %v209_v50 = vpop.f32.mrf.mxu0 }
  0xa2   :  { %v210_v52 = vadd.f32 %v209_v50, %v1902_v37  ;;  %v2005_v50 = vld [vmem:[%s2663_s0 + $0xc0] sm:$0xff] }
  0xa4   :  { %1463 = vmatmul.msk.f32.gmra.mxu0 %vm86_vm0, %v1931_v51  ;;  %v415_v53 = vmax.f32 %v210_v52, 0.0 }
  0xa6   :  { %534 = vmatmul.f32.gmra.mxu2 %v415_v53  ;;  %v2011_v53 = vld [vmem:[%s2663_s0 + $0xe8] sm:$0xff] }
  0xa7   :  { %1473 = vmatmul.msk.f32.gmra.mxu3 %vm86_vm0, %v2011_v53 }
  0xa9   :  { %v212_v54 = vpop.f32.mrf.mxu0 }
  0xaa   :  { %v213_v56 = vadd.f32 %v212_v54, %v1902_v37 }
  0xac   :  { %1464 = vmatmul.msk.f32.gmra.mxu0 %vm86_vm0, %v1939_v55  ;;  %v417_v57 = vmax.f32 %v213_v56, 0.0 }
  0xae   :  { %537 = vmatmul.f32.gmra.mxu2 %v417_v57 }
  0xb1   :  { %v215_v59 = vpop.f32.mrf.mxu0 }
  0xb2   :  { %v216_v61 = vadd.f32 %v215_v59, %v1902_v37  ;;  %v75_v59 = vld [vmem:[%s2664_s1 + $0x18] sm:$0xff] }
  0xb3   :  { %1578 = vmatpush.msrb.mxu3 %v75_v59  ;;  %310 = vmatpush.msra.mxu1 %v75_v59 }
  0xb4   :  { %1465 = vmatmul.msk.f32.gmra.mxu0 %vm86_vm0, %v1954_v60  ;;  %v419_v0 = vmax.f32 %v216_v61, 0.0  ;;  %v2024_v61 = vld [vmem:[%s2663_s0 + $0xf0] sm:$0xff] }
  0xb5   :  { %1474 = vmatmul.msk.f32.gmra.mxu3 %vm86_vm0, %v2024_v61 }
  0xb6   :  { %540 = vmatmul.f32.gmra.mxu2 %v419_v0 }
  0xb9   :  { %v218_v1 = vpop.f32.mrf.mxu0 }
  0xba   :  { %v219_v3 = vadd.f32 %v218_v1, %v1902_v37 }
  0xbc   :  { %1466 = vmatmul.msk.f32.gmra.mxu0 %vm86_vm0, %v1972_v2  ;;  %v421_v40 = vmax.f32 %v219_v3, 0.0  ;;  %v2032_v3 = vld [vmem:[%s2663_s0 + $0xf8] sm:$0xff] }
  0xbd   :  { %1475 = vmatmul.msk.f32.gmra.mxu3 %vm86_vm0, %v2032_v3 }
  0xbe   :  { %543 = vmatmul.f32.gmra.mxu2 %v421_v40 }
  0xc1   :  { %v221_v41 = vpop.f32.mrf.mxu0 }
  0xc2   :  { %v222_v44 = vadd.f32 %v221_v41, %v1902_v37  ;;  %v73_v41 = vld [vmem:[%s2664_s1 + $0x8] sm:$0xff] }
  0xc3   :  { %1579 = vmatpush.msrb.mxu3 %v73_v41  ;;  %311 = vmatpush.msra.mxu1 %v73_v41 }
  0xc4   :  { %1467 = vmatmul.msk.f32.gmra.mxu0 %vm86_vm0, %v1987_v42  ;;  %v423_v48 = vmax.f32 %v222_v44, 0.0  ;;  %1476 = vmatmul.msk.f32.vlgmr.msra.gmra.mxu1 %vm86_vm0, %v1694_v4 }
  0xc5   :  { %1580 = vmatpush.msra.mxu3 %v1757_v13 }
  0xc6   :  { %546 = vmatmul.f32.gmra.mxu2 %v423_v48  ;;  %1501 = vmatmul.msk.f32.vlgmr.msrb.gmra.mxu3 %vm86_vm0, %v1947_v58 }
  0xc7   :  { %1581 = vmatpush.msra.mxu3 %v1762_v14 }
  0xc9   :  { %v224_v49 = vpop.f32.mrf.mxu0  ;;  %1582 = vmatpush.msra.mxu3 %v1768_v15 }
  0xca   :  { %v225_v52 = vadd.f32 %v224_v49, %v1902_v37  ;;  %v782_v49 = vld [vmem:[%s2666_s3 + $0x78] sm:$0xff] }
  0xcb   :  { %1583 = vmatpush.msra.mxu3 %v1782_v17  ;;  %787 = vmatpush.msrb.mxu0 %v782_v49 }
  0xcc   :  { %1468 = vmatmul.msk.f32.gmra.mxu0 %vm86_vm0, %v2005_v50  ;;  %v425_v54 = vmax.f32 %v225_v52, 0.0  ;;  %1477 = vmatmul.msk.f32.gmra.mxu1 %vm86_vm0, %v1701_v5  ;;  %v502_v52 = vld [vmem:[%s2665_s2 + $0xe8] sm:$0xff] }
  0xcd   :  { %1584 = vmatpush.msra.mxu3 %v1787_v18 }
  0xce   :  { %549 = vmatmul.f32.gmra.mxu2 %v425_v54  ;;  %1502 = vmatmul.msk.f32.gmra.mxu3 %vm86_vm0, %v1960_v62  ;;  %v504_v62 = vld [vmem:[%s2665_s2 + $0xf8] sm:$0xff]  ;;  %v501_v54 = vld [vmem:[%s2665_s2 + $0xe0] sm:$0xff] }
  0xcf   :  { %1585 = vmatpush.msra.mxu3 %v1793_v19 }
  0xd1   :  { %v227_v56 = vpop.f32.mrf.mxu0  ;;  %1586 = vmatpush.msra.mxu3 %v1799_v20 }
  0xd2   :  { %v228_v57 = vadd.f32 %v227_v56, %v1902_v37 }
  0xd3   :  { %1587 = vmatpush.msra.mxu3 %v1813_v22 }
  0xd4   :  { %v427_v63 = vmax.f32 %v228_v57, 0.0  ;;  %1478 = vmatmul.msk.f32.gmra.mxu1 %vm86_vm0, %v1708_v6  ;;  %v500_v57 = vld [vmem:[%s2665_s2 + $0xd8] sm:$0xff] }
  0xd5   :  { %1588 = vmatpush.msra.mxu3 %v1818_v23 }
  0xd6   :  { %552 = vmatmul.f32.gmra.mxu2 %v427_v63  ;;  %1503 = vmatmul.msk.f32.gmra.mxu3 %vm86_vm0, %v1978_v38  ;;  %v499_v63 = vld [vmem:[%s2665_s2 + $0xd0] sm:$0xff] }
  0xd7   :  { %1589 = vmatpush.msra.mxu3 %v1824_v24 }
  0xd9   :  { %v230_v0 = vpop.f32.mrf.mxu0  ;;  %1590 = vmatpush.msra.mxu3 %v1830_v25 }
  0xda   :  { %v231_v1 = vadd.f32 %v230_v0, %v1902_v37 }
  0xdb   :  { %1591 = vmatpush.msra.mxu3 %v1844_v27 }
  0xdc   :  { %v429_v40 = vmax.f32 %v231_v1, 0.0  ;;  %1479 = vmatmul.msk.f32.gmra.mxu1 %vm86_vm0, %v1715_v7  ;;  %v275_v1 = vpop.f32.mrf.mxu3 }
  0xdd   :  { %1592 = vmatpush.msra.mxu3 %v1849_v28 }
  0xde   :  { %555 = vmatmul.f32.gmra.mxu2 %v429_v40  ;;  %1504 = vmatmul.msk.f32.gmra.mxu3 %vm86_vm0, %v1996_v46  ;;  %v498_v40 = vld [vmem:[%s2665_s2 + $0xc8] sm:$0xff] }
  0xdf   :  { %1593 = vmatpush.msra.mxu3 %v1856_v29 }
  0xe1   :  { %v233_v44 = vpop.f32.mrf.mxu0  ;;  %1594 = vmatpush.msra.mxu3 %v1867_v31 }
  0xe2   :  { %v234_v45 = vadd.f32 %v233_v44, %v1902_v37  ;;  %v497_v44 = vld [vmem:[%s2665_s2 + $0xc0] sm:$0xff] }
  0xe3   :  { %1595 = vmatpush.msra.mxu3 %v1875_v32 }
  0xe4   :  { %v431_v48 = vmax.f32 %v234_v45, 0.0  ;;  %1480 = vmatmul.msk.f32.gmra.mxu1 %vm86_vm0, %v1722_v8  ;;  %v780_v45 = vld [vmem:[%s2666_s3 + $0x68] sm:$0xff] }
  0xe5   :  { %622 = vmatpush.msrb.mxu3 %v504_v62 }
  0xe6   :  { %558 = vmatmul.f32.gmra.mxu2 %v431_v48  ;;  %1505 = vmatmul.msk.f32.gmra.mxu3 %vm86_vm0, %v2011_v53  ;;  %v278_v48 = vpop.f32.mrf.mxu3 }
  0xe9   :  { %v236_v4 = vpop.f32.mrf.mxu0 }
  0xea   :  { %v237_v13 = vadd.f32 %v236_v4, %v1902_v37 }
  0xec   :  { %v433_v14 = vmax.f32 %v237_v13, 0.0  ;;  %1481 = vmatmul.msk.f32.gmra.mxu1 %vm86_vm0, %v1729_v9  ;;  %v496_v13 = vld [vmem:[%s2665_s2 + $0xb8] sm:$0xff] }
  0xee   :  { %561 = vmatmul.f32.gmra.mxu2 %v433_v14  ;;  %1506 = vmatmul.msk.f32.gmra.mxu3 %vm86_vm0, %v2024_v61  ;;  %v781_v61 = vld [vmem:[%s2666_s3 + $0x70] sm:$0xff] }
  0xef   :  { %788 = vmatpush.msrb.mxu0 %v781_v61 }
  0xf1   :  { %v239_v5 = vpop.f32.mrf.mxu0  ;;  %789 = vmatpush.msrb.mxu0 %v780_v45  ;;  %v772_v45 = vld [vmem:[%s2666_s3 + $0x28] sm:$0xff] }
  0xf2   :  { %v240_v15 = vadd.f32 %v239_v5, %v1902_v37  ;;  %v276_v5 = vadd.f32 %v275_v1, %v1902_v37 }
  0xf4   :  { %v435_v17 = vmax.f32 %v240_v15, 0.0  ;;  %1482 = vmatmul.msk.f32.gmra.mxu1 %vm86_vm0, %v1736_v10  ;;  %v495_v15 = vld [vmem:[%s2665_s2 + $0xb0] sm:$0xff] }
  0xf6   :  { %564 = vmatmul.f32.gmra.mxu2 %v435_v17  ;;  %1507 = vmatmul.msk.f32.gmra.mxu3 %vm86_vm0, %v2032_v3  ;;  %v494_v17 = vld [vmem:[%s2665_s2 + $0xa8] sm:$0xff] }
  0xf9   :  { %v242_v6 = vpop.f32.mrf.mxu0 }
  0xfa   :  { %v243_v18 = vadd.f32 %v242_v6, %v1902_v37  ;;  %v779_v6 = vld [vmem:[%s2666_s3 + $0x60] sm:$0xff] }
  0xfb   :  { %790 = vmatpush.msrb.mxu0 %v779_v6 }
  0xfc   :  { %v437_v19 = vmax.f32 %v243_v18, 0.0  ;;  %1483 = vmatmul.msk.f32.gmra.mxu1 %vm86_vm0, %v1743_v11 }
  0xfe   :  { %567 = vmatmul.f32.gmra.mxu2 %v437_v19  ;;  %v279_v19 = vadd.f32 %v278_v48, %v1902_v37 }
 0x101   :  { %v245_v7 = vpop.f32.mrf.mxu0 }
 0x102   :  { %v246_v20 = vadd.f32 %v245_v7, %v1902_v37  ;;  %v493_v7 = vld [vmem:[%s2665_s2 + $0xa0] sm:$0xff] }
 0x104   :  { %v439_v22 = vmax.f32 %v246_v20, 0.0  ;;  %1484 = vmatmul.msk.f32.gmra.mxu1 %vm86_vm0, %v1750_v12  ;;  %v503_v12 = vld [vmem:[%s2665_s2 + $0xf0] sm:$0xff]  ;;  %v492_v20 = vld [vmem:[%s2665_s2 + $0x98] sm:$0xff] }
 0x105   :  { %623 = vmatpush.msrb.mxu3 %v503_v12  ;;  %v776_v12 = vld [vmem:[%s2666_s3 + $0x48] sm:$0xff] }
 0x106   :  { %570 = vmatmul.f32.gmra.mxu2 %v439_v22 }
 0x107   :  { %624 = vmatpush.msrb.mxu3 %v502_v52 }
 0x109   :  { %v248_v23 = vpop.f32.mrf.mxu0  ;;  %625 = vmatpush.msrb.mxu3 %v501_v54  ;;  %v775_v54 = vld [vmem:[%s2666_s3 + $0x40] sm:$0xff] }
 0x10a   :  { %v249_v24 = vadd.f32 %v248_v23, %v1902_v37 }
 0x10b   :  { %626 = vmatpush.msrb.mxu3 %v500_v57 }
 0x10c   :  { %v441_v25 = vmax.f32 %v249_v24, 0.0  ;;  %1485 = vmatmul.msk.f32.gmra.mxu1 %vm86_vm0, %v1774_v16  ;;  %v778_v24 = vld [vmem:[%s2666_s3 + $0x58] sm:$0xff] }
 0x10d   :  { %627 = vmatpush.msrb.mxu3 %v499_v63  ;;  %791 = vmatpush.msrb.mxu0 %v778_v24  ;;  %v938_v24 = vld [vmem:[%s2667_s4 + $0x30] sm:$0xff] }
 0x10e   :  { %573 = vmatmul.f32.gmra.mxu2 %v441_v25  ;;  %v281_v18 = vpop.f32.mrf.mxu3 }
 0x10f   :  { %628 = vmatpush.msrb.mxu3 %v498_v40  ;;  %v282_v23 = vadd.f32 %v281_v18, %v1902_v37 }
 0x111   :  { %v251_v8 = vpop.f32.mrf.mxu0  ;;  %629 = vmatpush.msrb.mxu3 %v497_v44  ;;  %v463_v25 = vmax.f32 %v282_v23, 0.0 }
 0x112   :  { %v252_v27 = vadd.f32 %v251_v8, %v1902_v37  ;;  %v490_v8 = vld [vmem:[%s2665_s2 + $0x88] sm:$0xff] }
 0x113   :  { %630 = vmatpush.msrb.mxu3 %v496_v13 }
 0x114   :  { %v443_v28 = vmax.f32 %v252_v27, 0.0  ;;  %1486 = vmatmul.msk.f32.gmra.mxu1 %vm86_vm0, %v1804_v21 }
 0x115   :  { %631 = vmatpush.msrb.mxu3 %v495_v15  ;;  %v771_v15 = vld [vmem:[%s2666_s3 + $0x20] sm:$0xff] }
 0x116   :  { %576 = vmatmul.f32.gmra.mxu2 %v443_v28 }
 0x117   :  { %632 = vmatpush.msrb.mxu3 %v494_v17 }
 0x119   :  { %v254_v9 = vpop.f32.mrf.mxu0  ;;  %633 = vmatpush.msrb.mxu3 %v493_v7 }
 0x11a   :  { %v255_v29 = vadd.f32 %v254_v9, %v1902_v37 }
 0x11b   :  { %634 = vmatpush.msrb.mxu3 %v492_v20 }
 0x11c   :  { %v445_v31 = vmax.f32 %v255_v29, 0.0  ;;  %1487 = vmatmul.msk.f32.gmra.mxu1 %vm86_vm0, %v1835_v26  ;;  %v489_v29 = vld [vmem:[%s2665_s2 + $0x80] sm:$0xff] }
 0x11e   :  { %579 = vmatmul.f32.gmra.mxu2 %v445_v31  ;;  %v284_v22 = vpop.f32.mrf.mxu3  ;;  %v777_v31 = vld [vmem:[%s2666_s3 + $0x50] sm:$0xff] }
 0x11f   :  { %v285_v27 = vadd.f32 %v284_v22, %v1902_v37  ;;  %792 = vmatpush.msrb.mxu0 %v777_v31 }
 0x121   :  { %v257_v10 = vpop.f32.mrf.mxu0  ;;  %793 = vmatpush.msrb.mxu0 %v776_v12 }
 0x122   :  { %v258_v32 = vadd.f32 %v257_v10, %v1902_v37 }
 0x123   :  { %794 = vmatpush.msrb.mxu0 %v775_v54 }
 0x124   :  { %v447_v58 = vmax.f32 %v258_v32, 0.0  ;;  %1488 = vmatmul.msk.f32.gmra.mxu1 %vm86_vm0, %v1861_v30 }
 0x126   :  { %582 = vmatmul.f32.gmra.mxu2 %v447_v58 }
 0x129   :  { %v260_v11 = vpop.f32.mrf.mxu0 }
 0x12a   :  { %v261_v38 = vadd.f32 %v260_v11, %v1902_v37  ;;  %v287_v9 = vpop.f32.mrf.mxu3 }
 0x12b   :  { %v288_v10 = vadd.f32 %v287_v9, %v1902_v37 }
 0x12c   :  { %v449_v46 = vmax.f32 %v261_v38, 0.0  ;;  %1489 = vmatmul.msk.f32.gmra.mxu1 %vm86_vm0, %v1881_v33  ;;  %v459_v33 = vmax.f32 %v276_v5, 0.0 }
 0x12e   :  { %585 = vmatmul.f32.gmra.mxu2 %v449_v46 }
 0x131   :  { %v263_v16 = vpop.f32.mrf.mxu0 }
 0x132   :  { %v264_v53 = vadd.f32 %v263_v16, %v1902_v37  ;;  %v2202_v16 = vperm.slane %v1897_v36, 1 }
 0x134   :  { %v451_v56 = vmax.f32 %v264_v53, 0.0  ;;  %1490 = vmatmul.msk.f32.gmra.mxu1 %vm86_vm0, %v1888_v34  ;;  %v461_v34 = vmax.f32 %v279_v19, 0.0 }
 0x136   :  { %588 = vmatmul.f32.gmra.mxu2 %v451_v56 }
 0x138   :  { %v290_v58 = vpop.f32.mrf.mxu3 }
 0x139   :  { %v266_v59 = vpop.f32.mrf.mxu0  ;;  %v291_v62 = vadd.f32 %v290_v58, %v1902_v37 }
 0x13a   :  { %v267_v21 = vadd.f32 %v266_v59, %v1902_v37 }
 0x13b   :  { %v469_v38 = vmax.f32 %v291_v62, 0.0 }
 0x13c   :  { %v453_v0 = vmax.f32 %v267_v21, 0.0  ;;  %1491 = vmatmul.msk.f32.gmra.mxu1 %vm86_vm0, %v1895_v35  ;;  %v491_v35 = vld [vmem:[%s2665_s2 + $0x90] sm:$0xff]  ;;  %v774_v21 = vld [vmem:[%s2666_s3 + $0x38] sm:$0xff] }
 0x13d   :  { %635 = vmatpush.msrb.mxu3 %v491_v35  ;;  %795 = vmatpush.msrb.mxu0 %v774_v21 }
 0x13e   :  { %591 = vmatmul.f32.gmra.mxu2 %v453_v0 }
 0x13f   :  { %636 = vmatpush.msrb.mxu3 %v490_v8 }
 0x140   :  { %v293_v46 = vpop.f32.mrf.mxu3 }
 0x141   :  { %v269_v26 = vpop.f32.mrf.mxu0  ;;  %v313_v28 = vpop.f32.mrf.mxu1  ;;  %637 = vmatpush.msrb.mxu3 %v489_v29  ;;  %v294_v49 = vadd.f32 %v293_v46, %v1902_v37 }
 0x142   :  { %v270_v3 = vadd.f32 %v269_v26, %v1902_v37 }
 0x143   :  { %v471_v52 = vmax.f32 %v294_v49, 0.0 }
 0x144   :  { %v455_v41 = vmax.f32 %v270_v3, 0.0  ;;  %1492 = vmatmul.msk.f32.gmra.mxu1 %vm86_vm0, %v1907_v39  ;;  %v465_v39 = vmax.f32 %v285_v27, 0.0 }
 0x146   :  { %594 = vmatmul.f32.vlgmr.msra.gmra.mxu3 %v455_v41 }
 0x149   :  { %v272_v30 = vpop.f32.mrf.mxu0  ;;  %v316_v32 = vpop.f32.mrf.mxu1 }
 0x14a   :  { %v273_v4 = vadd.f32 %v272_v30, %v1902_v37  ;;  %v2204_v53 = vpop.f32.mrf.mxu3  ;;  %v317_v36 = vadd.f32 %v316_v32, %v2202_v16 }
 0x14c   :  { %v457_v14 = vmax.f32 %v273_v4, 0.0  ;;  %1493 = vmatmul.msk.f32.gmra.mxu1 %vm86_vm0, %v1915_v43  ;;  %v467_v43 = vmax.f32 %v288_v10, 0.0  ;;  %v412_v59 = vmax.f32 %v317_v36, 0.0  ;;  %v768_v10 = vld [vmem:[%s2666_s3 + $0x8] sm:$0xff] }
 0x14e   :  { %597 = vmatmul.f32.gmra.mxu3 %v457_v14 }
 0x151   :  { %v319_v11 = vpop.f32.mrf.mxu1 }
 0x152   :  { %v320_v61 = vadd.f32 %v319_v11, %v2202_v16 }
 0x154   :  { %1494 = vmatmul.msk.f32.gmra.mxu1 %vm86_vm0, %v1923_v47  ;;  %v414_v0 = vmax.f32 %v320_v61, 0.0 }
 0x156   :  { %600 = vmatmul.f32.gmra.mxu3 %v459_v33 }
 0x159   :  { %v322_v47 = vpop.f32.mrf.mxu1 }
 0x15a   :  { %v323_v1 = vadd.f32 %v322_v47, %v2202_v16 }
 0x15c   :  { %1495 = vmatmul.msk.f32.gmra.mxu1 %vm86_vm0, %v1931_v51  ;;  %v314_v51 = vadd.f32 %v313_v28, %v2202_v16  ;;  %v416_v40 = vmax.f32 %v323_v1, 0.0  ;;  %v769_v28 = vld [vmem:[%s2666_s3 + $0x10] sm:$0xff] }
 0x15e   :  { %603 = vmatmul.f32.gmra.mxu3 %v461_v34  ;;  %v410_v37 = vmax.f32 %v314_v51, 0.0  ;;  %v770_v34 = vld [vmem:[%s2666_s3 + $0x18] sm:$0xff] }
 0x161   :  { %v325_v56 = vpop.f32.mrf.mxu1 }
 0x162   :  { %v326_v41 = vadd.f32 %v325_v56, %v2202_v16 }
 0x164   :  { %1496 = vmatmul.msk.f32.gmra.mxu1 %vm86_vm0, %v1939_v55  ;;  %v2212_v55 = vpop.f32.mrf.mxu3  ;;  %v418_v44 = vmax.f32 %v326_v41, 0.0 }
 0x166   :  { %606 = vmatmul.f32.gmra.mxu3 %v463_v25 }
 0x169   :  { %v328_v57 = vpop.f32.mrf.mxu1 }
 0x16a   :  { %v329_v48 = vadd.f32 %v328_v57, %v2202_v16 }
 0x16c   :  { %1497 = vmatmul.msk.f32.gmra.mxu1 %vm86_vm0, %v1954_v60  ;;  %v2221_v63 = vpop.f32.mrf.mxu3  ;;  %v420_v13 = vmax.f32 %v329_v48, 0.0 }
 0x16e   :  { %609 = vmatmul.f32.gmra.mxu3 %v465_v39 }
 0x171   :  { %v331_v60 = vpop.f32.mrf.mxu1 }
 0x172   :  { %v332_v5 = vadd.f32 %v331_v60, %v2202_v16  ;;  %v936_v60 = vld [vmem:[%s2667_s4 + $0x20] sm:$0xff] }
 0x174   :  { %1498 = vmatmul.msk.f32.gmra.mxu1 %vm86_vm0, %v1972_v2  ;;  %v773_v2 = vld [vmem:[%s2666_s3 + $0x30] sm:$0xff]  ;;  %v2231_v3 = vpop.f32.mrf.mxu3  ;;  %v422_v17 = vmax.f32 %v332_v5, 0.0 }
 0x175   :  { %796 = vmatpush.msrb.mxu0 %v773_v2 }
 0x176   :  { %612 = vmatmul.f32.gmra.mxu3 %v467_v43  ;;  %v526_v43 = vpop.f32.mrf.mxu2 }
 0x177   :  { %797 = vmatpush.msrb.mxu0 %v772_v45 }
 0x179   :  { %v334_v26 = vpop.f32.mrf.mxu1  ;;  %798 = vmatpush.msrb.mxu0 %v771_v15 }
 0x17a   :  { %v335_v6 = vadd.f32 %v334_v26, %v2202_v16 }
 0x17b   :  { %799 = vmatpush.msrb.mxu0 %v770_v34 }
 0x17c   :  { %1499 = vmatmul.msk.f32.gmra.mxu1 %vm86_vm0, %v1987_v42  ;;  %v2237_v30 = vpop.f32.mrf.mxu3  ;;  %v424_v7 = vmax.f32 %v335_v6, 0.0 }
 0x17d   :  { %800 = vmatpush.msrb.mxu0 %v769_v28 }
 0x17e   :  { %615 = vmatmul.f32.gmra.mxu3 %v469_v38  ;;  %v937_v38 = vld [vmem:[%s2667_s4 + $0x28] sm:$0xff]  ;;  %v529_v51 = vpop.f32.mrf.mxu2 }
 0x17f   :  { %801 = vmatpush.msrb.mxu0 %v768_v10 }
 0x181   :  { %v337_v42 = vpop.f32.mrf.mxu1 }
 0x182   :  { %v338_v20 = vadd.f32 %v337_v42, %v2202_v16 }
 0x184   :  { %1500 = vmatmul.msk.f32.gmra.mxu1 %vm86_vm0, %v2005_v50  ;;  %v939_v50 = vld [vmem:[%s2667_s4 + $0x38] sm:$0xff]  ;;  %v2243_v14 = vpop.f32.mrf.mxu3  ;;  %v426_v23 = vmax.f32 %v338_v20, 0.0 }
 0x185   :  { %1049 = vmatpush.msrb.mxu1 %v939_v50  ;;  %v2300_v50 = vld [vmem:[#allocation2 + $0x2] ss:$0 sm:$0xff] }
 0x186   :  { %618 = vmatmul.f32.gmra.mxu3 %v471_v52  ;;  %v767_v52 = vld [vmem:[%s2666_s3] sm:$0xff]  ;;  %v532_v57 = vpop.f32.mrf.mxu2  ;;  %v530_v20 = vadd.f32 %v2300_v50, %v529_v51 }
 0x187   :  { %1050 = vmatpush.msrb.mxu1 %v938_v24  ;;  %802 = vmatpush.msrb.mxu0 %v767_v52 }
 0x189   :  { %v340_v4 = vpop.f32.mrf.mxu1  ;;  %1051 = vmatpush.msrb.mxu1 %v937_v38 }
 0x18a   :  { %v341_v35 = vadd.f32 %v340_v4, %v2202_v16 }
 0x18b   :  { %1052 = vmatpush.msrb.mxu1 %v936_v60 }
 0x18c   :  { %v2250_v18 = vpop.f32.mrf.mxu3  ;;  %v428_v27 = vmax.f32 %v341_v35, 0.0 }
 0x18e   :  { %638 = vmatmul.f32.vlgmr.msrb.gmra.mxu3 %v410_v37  ;;  %v535_v2 = vpop.f32.mrf.mxu2 }
 0x191   :  { %v343_v33 = vpop.f32.mrf.mxu1 }
 0x192   :  { %v344_v39 = vadd.f32 %v343_v33, %v2202_v16 }
 0x194   :  { %v430_v31 = vmax.f32 %v344_v39, 0.0  ;;  %v533_v39 = vadd.f32 %v2300_v50, %v532_v57 }
 0x196   :  { %641 = vmatmul.f32.gmra.mxu3 %v412_v59 }
 0x199   :  { %v346_v19 = vpop.f32.mrf.mxu1 }
 0x19a   :  { %v347_v32 = vadd.f32 %v346_v19, %v2202_v16 }
 0x19c   :  { %v432_v11 = vmax.f32 %v347_v32, 0.0 }
 0x19e   :  { %644 = vmatmul.f32.gmra.mxu3 %v414_v0 }
 0x1a1   :  { %v349_v25 = vpop.f32.mrf.mxu1 }
 0x1a2   :  { %v350_v12 = vadd.f32 %v349_v25, %v2202_v16 }
 0x1a4   :  { %v434_v47 = vmax.f32 %v350_v12, 0.0  ;;  %v536_v12 = vadd.f32 %v2300_v50, %v535_v2 }
 0x1a6   :  { %647 = vmatmul.f32.gmra.mxu3 %v416_v40 }
 0x1a9   :  { %v352_v9 = vpop.f32.mrf.mxu1 }
 0x1aa   :  { %v353_v54 = vadd.f32 %v352_v9, %v2202_v16 }
 0x1ac   :  { %v436_v37 = vmax.f32 %v353_v54, 0.0  ;;  %v934_v54 = vld [vmem:[%s2667_s4 + $0x10] sm:$0xff] }
 0x1ae   :  { %650 = vmatmul.f32.gmra.mxu3 %v418_v44  ;;  %v538_v44 = vpop.f32.mrf.mxu2 }
 0x1af   :  { %v539_v57 = vadd.f32 %v2300_v50, %v538_v44 }
 0x1b1   :  { %v355_v58 = vpop.f32.mrf.mxu1 }
 0x1b2   :  { %v356_v59 = vadd.f32 %v355_v58, %v2202_v16 }
 0x1b4   :  { %v438_v61 = vmax.f32 %v356_v59, 0.0 }
 0x1b6   :  { %653 = vmatmul.f32.gmra.mxu3 %v420_v13  ;;  %v527_v13 = vadd.f32 %v2300_v50, %v526_v43  ;;  %v541_v6 = vpop.f32.mrf.mxu2 }
 0x1b9   :  { %v358_v49 = vpop.f32.mrf.mxu1 }
 0x1ba   :  { %v359_v1 = vadd.f32 %v358_v49, %v2202_v16 }
 0x1bc   :  { %v440_v40 = vmax.f32 %v359_v1, 0.0 }
 0x1be   :  { %656 = vmatmul.f32.gmra.mxu3 %v422_v17  ;;  %v544_v28 = vpop.f32.mrf.mxu2 }
 0x1c1   :  { %v361_v36 = vpop.f32.mrf.mxu1 }
 0x1c2   :  { %v362_v41 = vadd.f32 %v361_v36, %v2202_v16 }
 0x1c4   :  { %v442_v48 = vmax.f32 %v362_v41, 0.0 }
 0x1c6   :  { %659 = vmatmul.f32.gmra.mxu3 %v424_v7  ;;  %v935_v7 = vld [vmem:[%s2667_s4 + $0x18] sm:$0xff]  ;;  %v547_v38 = vpop.f32.mrf.mxu2 }
 0x1c7   :  { %1053 = vmatpush.msrb.mxu1 %v935_v7 }
 0x1c9   :  { %v2256_v22 = vpop.f32.mrf.mxu3  ;;  %v364_v0 = vpop.f32.mrf.mxu1  ;;  %1054 = vmatpush.msrb.mxu1 %v934_v54 }
 0x1ca   :  { %v365_v4 = vadd.f32 %v364_v0, %v2202_v16 }
 0x1cc   :  { %v444_v33 = vmax.f32 %v365_v4, 0.0 }
 0x1ce   :  { %662 = vmatmul.f32.gmra.mxu3 %v426_v23  ;;  %v550_v59 = vpop.f32.mrf.mxu2 }
 0x1d1   :  { %v2262_v8 = vpop.f32.mrf.mxu3  ;;  %v367_v42 = vpop.f32.mrf.mxu1 }
 0x1d2   :  { %v368_v34 = vadd.f32 %v367_v42, %v2202_v16 }
 0x1d4   :  { %v446_v24 = vmax.f32 %v368_v34, 0.0 }
 0x1d6   :  { %665 = vmatmul.f32.gmra.mxu3 %v428_v27 }
 0x1d9   :  { %v2268_v29 = vpop.f32.mrf.mxu3  ;;  %v370_v15 = vpop.f32.mrf.mxu1 }
 0x1da   :  { %v371_v9 = vadd.f32 %v370_v15, %v2202_v16  ;;  %v545_v15 = vadd.f32 %v2300_v50, %v544_v28 }
 0x1dc   :  { %v448_v10 = vmax.f32 %v371_v9, 0.0  ;;  %v1193_v9 = vld [vmem:[%s2668_s5 + $0x38] sm:$0xff] }
 0x1dd   :  { %1302 = vmatpush.msrb.mxu2 %v1193_v9  ;;  %1596 = vmatpush.msra.mxu3 %v1193_v9 }
 0x1de   :  { %668 = vmatmul.f32.gmra.mxu3 %v430_v31 }
 0x1e1   :  { %v2274_v62 = vpop.f32.mrf.mxu3  ;;  %v373_v35 = vpop.f32.mrf.mxu1 }
 0x1e6   :  { %671 = vmatmul.f32.gmra.mxu3 %v432_v11  ;;  %v374_v11 = vadd.f32 %v373_v35, %v2202_v16 }
 0x1e9   :  { %v2280_v46 = vpop.f32.mrf.mxu3  ;;  %v376_v43 = vpop.f32.mrf.mxu1 }
 0x1ee   :  { %674 = vmatmul.f32.gmra.mxu3 %v434_v47  ;;  %v450_v47 = vmax.f32 %v374_v11, 0.0 }
 0x1f1   :  { %v2286_v56 = vpop.f32.mrf.mxu3  ;;  %v379_v36 = vpop.f32.mrf.mxu1 }
 0x1f2   :  { %v380_v2 = vadd.f32 %v379_v36, %v2202_v16  ;;  %v395_v36 = vadd.f32 %v2221_v63, %v2202_v16 }
 0x1f6   :  { %677 = vmatmul.f32.gmra.mxu3 %v436_v37  ;;  %v377_v37 = vadd.f32 %v376_v43, %v2202_v16 }
 0x1f8   :  { %v452_v60 = vmax.f32 %v377_v37, 0.0 }
 0x1f9   :  { %v2289_v21 = vpop.f32.mrf.mxu3  ;;  %v382_v42 = vpop.f32.mrf.mxu1 }
 0x1fa   :  { %v383_v44 = vadd.f32 %v382_v42, %v2202_v16 }
 0x1fe   :  { %680 = vmatmul.f32.gmra.mxu3 %v438_v61 }
 0x201   :  { %v2295_v26 = vpop.f32.mrf.mxu3  ;;  %v385_v7 = vpop.f32.mrf.mxu1 }
 0x206   :  { %683 = vmatmul.f32.gmra.mxu3 %v440_v40  ;;  %v542_v40 = vadd.f32 %v2300_v50, %v541_v6  ;;  %v386_v6 = vadd.f32 %v385_v7, %v2202_v16  ;;  %v1191_v7 = vld [vmem:[%s2668_s5 + $0x28] sm:$0xff] }
 0x208   :  { %v458_v35 = vmax.f32 %v386_v6, 0.0 }
 0x209   :  { %v2298_v45 = vpop.f32.mrf.mxu3 }
 0x20e   :  { %686 = vmatmul.f32.gmra.mxu3 %v442_v48  ;;  %v454_v48 = vmax.f32 %v380_v2, 0.0  ;;  %v398_v2 = vadd.f32 %v2231_v3, %v2202_v16 }
 0x211   :  { %v639_v5 = vpop.f32.mrf.mxu3 }
 0x212   :  { %v640_v17 = vadd.f32 %v639_v5, %v527_v13  ;;  %v553_v13 = vpop.f32.mrf.mxu2 }
 0x214   :  { %v735_v19 = vmax.f32 %v640_v17, 0.0  ;;  %v456_v17 = vmax.f32 %v383_v44, 0.0 }
 0x216   :  { %689 = vmatmul.f32.gmra.mxu3 %v444_v33  ;;  %803 = vmatmul.f32.vlgmr.msrb.gmra.mxu0 %v735_v19 }
 0x219   :  { %v642_v23 = vpop.f32.mrf.mxu3 }
 0x21a   :  { %v643_v25 = vadd.f32 %v642_v23, %v530_v20  ;;  %v556_v20 = vpop.f32.mrf.mxu2  ;;  %v933_v23 = vld [vmem:[%s2667_s4 + $0x8] sm:$0xff] }
 0x21b   :  { %1055 = vmatpush.msrb.mxu1 %v933_v23  ;;  %v557_v37 = vadd.f32 %v2300_v50, %v556_v20 }
 0x21c   :  { %v736_v27 = vmax.f32 %v643_v25, 0.0 }
 0x21e   :  { %692 = vmatmul.f32.gmra.mxu3 %v446_v24  ;;  %806 = vmatmul.f32.gmra.mxu0 %v736_v27  ;;  %v548_v24 = vadd.f32 %v2300_v50, %v547_v38  ;;  %v554_v38 = vadd.f32 %v2300_v50, %v553_v13  ;;  %v401_v13 = vadd.f32 %v2237_v30, %v2202_v16 }
 0x221   :  { %v645_v31 = vpop.f32.mrf.mxu3 }
 0x222   :  { %v646_v32 = vadd.f32 %v645_v31, %v533_v39  ;;  %v559_v39 = vpop.f32.mrf.mxu2  ;;  %v551_v31 = vadd.f32 %v2300_v50, %v550_v59 }
 0x224   :  { %v737_v58 = vmax.f32 %v646_v32, 0.0 }
 0x226   :  { %695 = vmatmul.f32.gmra.mxu3 %v448_v10  ;;  %809 = vmatmul.f32.gmra.mxu0 %v737_v58  ;;  %v389_v10 = vadd.f32 %v2204_v53, %v2202_v16  ;;  %v932_v53 = vld [vmem:[%s2667_s4] sm:$0xff] }
 0x227   :  { %1056 = vmatpush.msrb.mxu1 %v932_v53 }
 0x228   :  { %v460_v43 = vmax.f32 %v389_v10, 0.0 }
 0x229   :  { %v648_v49 = vpop.f32.mrf.mxu3 }
 0x22a   :  { %v649_v52 = vadd.f32 %v648_v49, %v536_v12  ;;  %v392_v12 = vadd.f32 %v2212_v55, %v2202_v16  ;;  %v562_v49 = vpop.f32.mrf.mxu2 }
 0x22c   :  { %v738_v51 = vmax.f32 %v649_v52, 0.0 }
 0x22e   :  { %698 = vmatmul.f32.gmra.mxu3 %v450_v47  ;;  %812 = vmatmul.f32.gmra.mxu0 %v738_v51  ;;  %v462_v51 = vmax.f32 %v392_v12, 0.0 }
 0x231   :  { %v651_v61 = vpop.f32.mrf.mxu3 }
 0x232   :  { %v652_v0 = vadd.f32 %v651_v61, %v539_v57  ;;  %v565_v55 = vpop.f32.mrf.mxu2  ;;  %v464_v61 = vmax.f32 %v395_v36, 0.0 }
 0x233   :  { %v566_v3 = vadd.f32 %v2300_v50, %v565_v55 }
 0x234   :  { %v739_v1 = vmax.f32 %v652_v0, 0.0  ;;  %v1192_v0 = vld [vmem:[%s2668_s5 + $0x30] sm:$0xff] }
 0x235   :  { %1303 = vmatpush.msrb.mxu2 %v1192_v0  ;;  %1597 = vmatpush.msra.mxu3 %v1192_v0 }
 0x236   :  { %701 = vmatmul.f32.gmra.mxu3 %v452_v60  ;;  %815 = vmatmul.f32.gmra.mxu0 %v739_v1  ;;  %v560_v1 = vadd.f32 %v2300_v50, %v559_v39 }
 0x237   :  { %1304 = vmatpush.msrb.mxu2 %v1191_v7  ;;  %1598 = vmatpush.msra.mxu3 %v1191_v7 }
 0x239   :  { %v654_v41 = vpop.f32.mrf.mxu3 }
 0x23a   :  { %v655_v4 = vadd.f32 %v654_v41, %v542_v40  ;;  %v466_v41 = vmax.f32 %v398_v2, 0.0 }
 0x23c   :  { %v740_v5 = vmax.f32 %v655_v4, 0.0  ;;  %v563_v4 = vadd.f32 %v2300_v50, %v562_v49 }
 0x23e   :  { %704 = vmatmul.f32.gmra.mxu3 %v454_v48  ;;  %818 = vmatmul.f32.gmra.mxu0 %v740_v5  ;;  %v568_v48 = vpop.f32.mrf.mxu2 }
 0x23f   :  { %v569_v23 = vadd.f32 %v2300_v50, %v568_v48 }
 0x241   :  { %v657_v33 = vpop.f32.mrf.mxu3 }
 0x242   :  { %v658_v19 = vadd.f32 %v657_v33, %v545_v15  ;;  %v468_v15 = vmax.f32 %v401_v13, 0.0 }
 0x244   :  { %v741_v34 = vmax.f32 %v658_v19, 0.0  ;;  %v404_v19 = vadd.f32 %v2243_v14, %v2202_v16 }
 0x246   :  { %707 = vmatmul.f32.gmra.mxu3 %v456_v17  ;;  %821 = vmatmul.f32.gmra.mxu0 %v741_v34  ;;  %v571_v17 = vpop.f32.mrf.mxu2  ;;  %v470_v20 = vmax.f32 %v404_v19, 0.0 }
 0x247   :  { %v572_v9 = vadd.f32 %v2300_v50, %v571_v17 }
 0x249   :  { %v660_v25 = vpop.f32.mrf.mxu3 }
 0x24a   :  { %v661_v27 = vadd.f32 %v660_v25, %v548_v24  ;;  %v407_v24 = vadd.f32 %v2250_v18, %v2202_v16  ;;  %v2365_v18 = vld [vmem:[#allocation2 + $0x3] ss:$0 sm:$0xff] }
 0x24c   :  { %v742_v28 = vmax.f32 %v661_v27, 0.0  ;;  %v472_v27 = vmax.f32 %v407_v24, 0.0 }
 0x24e   :  { %710 = vmatmul.f32.gmra.mxu3 %v458_v35  ;;  %824 = vmatmul.f32.gmra.mxu0 %v742_v28  ;;  %v574_v25 = vpop.f32.mrf.mxu2 }
 0x24f   :  { %v575_v16 = vadd.f32 %v2300_v50, %v574_v25 }
 0x251   :  { %v663_v32 = vpop.f32.mrf.mxu3 }
 0x252   :  { %v664_v58 = vadd.f32 %v663_v32, %v551_v31 }
 0x254   :  { %v743_v11 = vmax.f32 %v664_v58, 0.0  ;;  %v1190_v58 = vld [vmem:[%s2668_s5 + $0x20] sm:$0xff] }
 0x255   :  { %1305 = vmatpush.msrb.mxu2 %v1190_v58  ;;  %1599 = vmatpush.msra.mxu3 %v1190_v58 }
 0x256   :  { %713 = vmatmul.f32.gmra.mxu3 %v460_v43  ;;  %827 = vmatmul.f32.gmra.mxu0 %v743_v11  ;;  %v577_v10 = vpop.f32.mrf.mxu2 }
 0x259   :  { %v666_v47 = vpop.f32.mrf.mxu3 }
 0x25a   :  { %v667_v52 = vadd.f32 %v666_v47, %v554_v38 }
 0x25c   :  { %v744_v54 = vmax.f32 %v667_v52, 0.0 }
 0x25e   :  { %716 = vmatmul.f32.gmra.mxu3 %v462_v51  ;;  %830 = vmatmul.f32.gmra.mxu0 %v744_v54  ;;  %v580_v47 = vpop.f32.mrf.mxu2  ;;  %v578_v51 = vadd.f32 %v2300_v50, %v577_v10 }
 0x261   :  { %v669_v57 = vpop.f32.mrf.mxu3 }
 0x262   :  { %v670_v59 = vadd.f32 %v669_v57, %v557_v37 }
 0x264   :  { %v745_v60 = vmax.f32 %v670_v59, 0.0 }
 0x266   :  { %719 = vmatmul.f32.gmra.mxu3 %v464_v61  ;;  %833 = vmatmul.f32.gmra.mxu0 %v745_v60  ;;  %v583_v55 = vpop.f32.mrf.mxu2  ;;  %v581_v61 = vadd.f32 %v2300_v50, %v580_v47 }
 0x269   :  { %v672_v40 = vpop.f32.mrf.mxu3 }
 0x26a   :  { %v673_v63 = vadd.f32 %v672_v40, %v560_v1 }
 0x26c   :  { %v746_v42 = vmax.f32 %v673_v63, 0.0 }
 0x26e   :  { %722 = vmatmul.f32.gmra.mxu3 %v466_v41  ;;  %836 = vmatmul.f32.gmra.mxu0 %v746_v42  ;;  %v1189_v41 = vld [vmem:[%s2668_s5 + $0x18] sm:$0xff]  ;;  %v584_v42 = vadd.f32 %v2300_v50, %v583_v55  ;;  %v586_v48 = vpop.f32.mrf.mxu2 }
 0x26f   :  { %1306 = vmatpush.msrb.mxu2 %v1189_v41  ;;  %1600 = vmatpush.msra.mxu3 %v1189_v41  ;;  %v587_v17 = vadd.f32 %v2300_v50, %v586_v48  ;;  %v605_v41 = vadd.f32 %v2300_v50, %v2274_v62 }
 0x271   :  { %v675_v5 = vpop.f32.mrf.mxu3 }
 0x272   :  { %v676_v44 = vadd.f32 %v675_v5, %v563_v4 }
 0x274   :  { %v747_v33 = vmax.f32 %v676_v44, 0.0 }
 0x276   :  { %725 = vmatmul.f32.gmra.mxu3 %v468_v15  ;;  %839 = vmatmul.f32.gmra.mxu0 %v747_v33  ;;  %v589_v7 = vpop.f32.mrf.mxu2 }
 0x279   :  { %v678_v34 = vpop.f32.mrf.mxu3 }
 0x27a   :  { %v679_v30 = vadd.f32 %v678_v34, %v566_v3 }
 0x27c   :  { %v748_v6 = vmax.f32 %v679_v30, 0.0 }
 0x27e   :  { %728 = vmatmul.f32.gmra.mxu3 %v470_v20  ;;  %842 = vmatmul.f32.gmra.mxu0 %v748_v6 }
 0x281   :  { %v681_v35 = vpop.f32.mrf.mxu3 }
 0x282   :  { %v682_v14 = vadd.f32 %v681_v35, %v569_v23  ;;  %v590_v23 = vadd.f32 %v2300_v50, %v589_v7  ;;  %v1186_v7 = vld [vmem:[%s2668_s5] sm:$0xff] }
 0x284   :  { %v749_v28 = vmax.f32 %v682_v14, 0.0 }
 0x286   :  { %731 = vmatmul.f32.gmra.mxu3 %v472_v27  ;;  %845 = vmatmul.f32.gmra.mxu0 %v749_v28  ;;  %v592_v28 = vpop.f32.mrf.mxu2 }
 0x289   :  { %v684_v39 = vpop.f32.mrf.mxu3 }
 0x28a   :  { %v685_v31 = vadd.f32 %v684_v39, %v572_v9  ;;  %v1188_v39 = vld [vmem:[%s2668_s5 + $0x10] sm:$0xff] }
 0x28b   :  { %1307 = vmatpush.msrb.mxu2 %v1188_v39  ;;  %1601 = vmatpush.msra.mxu3 %v1188_v39  ;;  %v617_v39 = vadd.f32 %v2300_v50, %v2295_v26 }
 0x28c   :  { %v750_v32 = vmax.f32 %v685_v31, 0.0  ;;  %v593_v31 = vadd.f32 %v2300_v50, %v592_v28 }
 0x28e   :  { %848 = vmatmul.f32.gmra.mxu0 %v750_v32 }
 0x291   :  { %v687_v43 = vpop.f32.mrf.mxu3 }
 0x292   :  { %v688_v11 = vadd.f32 %v687_v43, %v575_v16 }
 0x293   :  { %v804_v38 = vpop.f32.mrf.mxu0 }
 0x294   :  { %v751_v12 = vmax.f32 %v688_v11, 0.0  ;;  %v805_v49 = vadd.f32 %v2365_v18, %v804_v38  ;;  %v596_v38 = vadd.f32 %v2300_v50, %v2256_v22 }
 0x296   :  { %v900_v52 = vmax.f32 %v805_v49, 0.0  ;;  %851 = vmatmul.f32.gmra.mxu0 %v751_v12 }
 0x298   :  { %1508 = vmatmul.msk.f32.vlgmr.msrb.gmra.mxu1 %vm944_vm1, %v900_v52 }
 0x299   :  { %v690_v54 = vpop.f32.mrf.mxu3 }
 0x29a   :  { %v691_v53 = vadd.f32 %v690_v54, %v578_v51 }
 0x29b   :  { %v807_v37 = vpop.f32.mrf.mxu0 }
 0x29c   :  { %v752_v36 = vmax.f32 %v691_v53, 0.0  ;;  %v808_v57 = vadd.f32 %v2365_v18, %v807_v37  ;;  %v599_v53 = vadd.f32 %v2300_v50, %v2262_v8 }
 0x29e   :  { %v901_v59 = vmax.f32 %v808_v57, 0.0  ;;  %854 = vmatmul.f32.gmra.mxu0 %v752_v36 }
 0x2a0   :  { %1509 = vmatmul.msk.f32.gmra.mxu1 %vm944_vm1, %v901_v59 }
 0x2a1   :  { %v693_v60 = vpop.f32.mrf.mxu3 }
 0x2a2   :  { %v694_v0 = vadd.f32 %v693_v60, %v581_v61  ;;  %v1187_v61 = vld [vmem:[%s2668_s5 + $0x8] sm:$0xff]  ;;  %v602_v60 = vadd.f32 %v2300_v50, %v2268_v29 }
 0x2a3   :  { %v810_v1 = vpop.f32.mrf.mxu0  ;;  %1308 = vmatpush.msrb.mxu2 %v1187_v61  ;;  %1602 = vmatpush.msra.mxu3 %v1187_v61 }
 0x2a4   :  { %v753_v2 = vmax.f32 %v694_v0, 0.0  ;;  %v811_v40 = vadd.f32 %v2365_v18, %v810_v1 }
 0x2a5   :  { %1309 = vmatpush.msrb.mxu2 %v1186_v7  ;;  %1603 = vmatpush.msra.mxu3 %v1186_v7 }
 0x2a6   :  { %v902_v63 = vmax.f32 %v811_v40, 0.0  ;;  %857 = vmatmul.f32.gmra.mxu0 %v753_v2 }
 0x2a8   :  { %1510 = vmatmul.msk.f32.gmra.mxu1 %vm944_vm1, %v902_v63 }
 0x2a9   :  { %v696_v4 = vpop.f32.mrf.mxu3 }
 0x2aa   :  { %v697_v13 = vadd.f32 %v696_v4, %v584_v42 }
 0x2ab   :  { %v813_v5 = vpop.f32.mrf.mxu0 }
 0x2ac   :  { %v754_v44 = vmax.f32 %v697_v13, 0.0  ;;  %v814_v15 = vadd.f32 %v2365_v18, %v813_v5 }
 0x2ae   :  { %v903_v33 = vmax.f32 %v814_v15, 0.0  ;;  %860 = vmatmul.f32.gmra.mxu0 %v754_v44  ;;  %v608_v44 = vadd.f32 %v2300_v50, %v2280_v46 }
 0x2b0   :  { %1511 = vmatmul.msk.f32.gmra.mxu1 %vm944_vm1, %v903_v33 }
 0x2b1   :  { %v699_v3 = vpop.f32.mrf.mxu3 }
 0x2b2   :  { %v700_v19 = vadd.f32 %v699_v3, %v587_v17 }
 0x2b3   :  { %v816_v34 = vpop.f32.mrf.mxu0 }
 0x2b4   :  { %v755_v30 = vmax.f32 %v700_v19, 0.0  ;;  %v817_v20 = vadd.f32 %v2365_v18, %v816_v34  ;;  %v611_v34 = vadd.f32 %v2300_v50, %v2286_v56 }
 0x2b6   :  { %v904_v6 = vmax.f32 %v817_v20, 0.0  ;;  %863 = vmatmul.f32.gmra.mxu0 %v755_v30 }
 0x2b8   :  { %1512 = vmatmul.msk.f32.gmra.mxu1 %vm944_vm1, %v904_v6 }
 0x2b9   :  { %v702_v24 = vpop.f32.mrf.mxu3 }
 0x2ba   :  { %v703_v25 = vadd.f32 %v702_v24, %v590_v23 }
 0x2bb   :  { %v819_v35 = vpop.f32.mrf.mxu0 }
 0x2bc   :  { %v756_v14 = vmax.f32 %v703_v25, 0.0  ;;  %v820_v27 = vadd.f32 %v2365_v18, %v819_v35  ;;  %v614_v25 = vadd.f32 %v2300_v50, %v2289_v21 }
 0x2be   :  { %v905_v9 = vmax.f32 %v820_v27, 0.0  ;;  %866 = vmatmul.f32.gmra.mxu0 %v756_v14 }
 0x2c0   :  { %1513 = vmatmul.msk.f32.gmra.mxu1 %vm944_vm1, %v905_v9 }
 0x2c1   :  { %v705_v10 = vpop.f32.mrf.mxu3 }
 0x2c2   :  { %v706_v32 = vadd.f32 %v705_v10, %v593_v31 }
 0x2c3   :  { %v822_v58 = vpop.f32.mrf.mxu0 }
 0x2c4   :  { %v757_v16 = vmax.f32 %v706_v32, 0.0  ;;  %v823_v43 = vadd.f32 %v2365_v18, %v822_v58 }
 0x2c6   :  { %v906_v11 = vmax.f32 %v823_v43, 0.0  ;;  %869 = vmatmul.f32.gmra.mxu0 %v757_v16  ;;  %v620_v43 = vadd.f32 %v2300_v50, %v2298_v45 }
 0x2c8   :  { %1514 = vmatmul.msk.f32.gmra.mxu1 %vm944_vm1, %v906_v11 }
 0x2c9   :  { %v708_v12 = vpop.f32.mrf.mxu3 }
 0x2ca   :  { %v709_v49 = vadd.f32 %v708_v12, %v596_v38 }
 0x2cb   :  { %v825_v47 = vpop.f32.mrf.mxu0 }
 0x2cc   :  { %v758_v52 = vmax.f32 %v709_v49, 0.0  ;;  %v826_v51 = vadd.f32 %v2365_v18, %v825_v47 }
 0x2ce   :  { %v907_v54 = vmax.f32 %v826_v51, 0.0  ;;  %872 = vmatmul.f32.gmra.mxu0 %v758_v52  ;;  %v2435_v52 = vld [vmem:[#allocation2 + $0x4] ss:$0 sm:$0xff] }
 0x2d0   :  { %1515 = vmatmul.msk.f32.gmra.mxu1 %vm944_vm1, %v907_v54 }
 0x2d1   :  { %v711_v37 = vpop.f32.mrf.mxu3 }
 0x2d2   :  { %v712_v36 = vadd.f32 %v711_v37, %v599_v53 }
 0x2d3   :  { %v828_v57 = vpop.f32.mrf.mxu0 }
 0x2d4   :  { %v759_v59 = vmax.f32 %v712_v36, 0.0  ;;  %v829_v22 = vadd.f32 %v2365_v18, %v828_v57 }
 0x2d6   :  { %v908_v55 = vmax.f32 %v829_v22, 0.0  ;;  %875 = vmatmul.f32.gmra.mxu0 %v759_v59 }
 0x2d8   :  { %1516 = vmatmul.msk.f32.gmra.mxu1 %vm944_vm1, %v908_v55 }
 0x2d9   :  { %v714_v8 = vpop.f32.mrf.mxu3 }
 0x2da   :  { %v715_v0 = vadd.f32 %v714_v8, %v602_v60 }
 0x2db   :  { %v831_v1 = vpop.f32.mrf.mxu0 }
 0x2dc   :  { %v760_v2 = vmax.f32 %v715_v0, 0.0  ;;  %v832_v40 = vadd.f32 %v2365_v18, %v831_v1 }
 0x2de   :  { %v909_v63 = vmax.f32 %v832_v40, 0.0  ;;  %878 = vmatmul.f32.gmra.mxu0 %v760_v2 }
 0x2e0   :  { %1517 = vmatmul.msk.f32.gmra.mxu1 %vm944_vm1, %v909_v63 }
 0x2e1   :  { %v717_v42 = vpop.f32.mrf.mxu3 }
 0x2e2   :  { %v718_v48 = vadd.f32 %v717_v42, %v605_v41 }
 0x2e3   :  { %v834_v4 = vpop.f32.mrf.mxu0 }
 0x2e4   :  { %v761_v13 = vmax.f32 %v718_v48, 0.0  ;;  %v835_v29 = vadd.f32 %v2365_v18, %v834_v4 }
 0x2e6   :  { %v910_v5 = vmax.f32 %v835_v29, 0.0  ;;  %881 = vmatmul.f32.gmra.mxu0 %v761_v13 }
 0x2e8   :  { %1518 = vmatmul.msk.f32.gmra.mxu1 %vm944_vm1, %v910_v5 }
 0x2e9   :  { %v720_v15 = vpop.f32.mrf.mxu3 }
 0x2ea   :  { %v721_v33 = vadd.f32 %v720_v15, %v608_v44 }
 0x2eb   :  { %v837_v17 = vpop.f32.mrf.mxu0 }
 0x2ec   :  { %v762_v3 = vmax.f32 %v721_v33, 0.0  ;;  %v838_v62 = vadd.f32 %v2365_v18, %v837_v17 }
 0x2ee   :  { %v911_v19 = vmax.f32 %v838_v62, 0.0  ;;  %884 = vmatmul.f32.gmra.mxu0 %v762_v3 }
 0x2f0   :  { %1519 = vmatmul.msk.f32.gmra.mxu1 %vm944_vm1, %v911_v19 }
 0x2f1   :  { %v723_v46 = vpop.f32.mrf.mxu3 }
 0x2f2   :  { %v724_v30 = vadd.f32 %v723_v46, %v611_v34 }
 0x2f3   :  { %v840_v20 = vpop.f32.mrf.mxu0 }
 0x2f4   :  { %v763_v6 = vmax.f32 %v724_v30, 0.0  ;;  %v841_v23 = vadd.f32 %v2365_v18, %v840_v20 }
 0x2f6   :  { %v912_v24 = vmax.f32 %v841_v23, 0.0  ;;  %887 = vmatmul.f32.gmra.mxu0 %v763_v6 }
 0x2f8   :  { %1520 = vmatmul.msk.f32.gmra.mxu1 %vm944_vm1, %v912_v24 }
 0x2f9   :  { %v726_v35 = vpop.f32.mrf.mxu3 }
 0x2fa   :  { %v727_v14 = vadd.f32 %v726_v35, %v614_v25 }
 0x2fb   :  { %v843_v27 = vpop.f32.mrf.mxu0 }
 0x2fc   :  { %v764_v28 = vmax.f32 %v727_v14, 0.0  ;;  %v844_v56 = vadd.f32 %v2365_v18, %v843_v27 }
 0x2fe   :  { %v913_v9 = vmax.f32 %v844_v56, 0.0  ;;  %890 = vmatmul.f32.gmra.mxu0 %v764_v28 }
 0x300   :  { %1521 = vmatmul.msk.f32.gmra.mxu1 %vm944_vm1, %v913_v9 }
 0x301   :  { %v729_v31 = vpop.f32.mrf.mxu3 }
 0x302   :  { %v730_v10 = vadd.f32 %v729_v31, %v617_v39 }
 0x303   :  { %v846_v32 = vpop.f32.mrf.mxu0 }
 0x304   :  { %v765_v58 = vmax.f32 %v730_v10, 0.0  ;;  %v847_v21 = vadd.f32 %v2365_v18, %v846_v32 }
 0x306   :  { %v914_v16 = vmax.f32 %v847_v21, 0.0  ;;  %893 = vmatmul.f32.gmra.mxu0 %v765_v58 }
 0x308   :  { %1522 = vmatmul.msk.f32.gmra.mxu1 %vm944_vm1, %v914_v16 }
 0x309   :  { %v732_v11 = vpop.f32.mrf.mxu3 }
 0x30a   :  { %v733_v38 = vadd.f32 %v732_v11, %v620_v43 }
 0x30b   :  { %v849_v12 = vpop.f32.mrf.mxu0 }
 0x30c   :  { %v766_v49 = vmax.f32 %v733_v38, 0.0  ;;  %v850_v26 = vadd.f32 %v2365_v18, %v849_v12 }
 0x30e   :  { %v915_v47 = vmax.f32 %v850_v26, 0.0  ;;  %896 = vmatmul.f32.gmra.mxu0 %v766_v49 }
 0x310   :  { %1523 = vmatmul.msk.f32.gmra.mxu1 %vm944_vm1, %v915_v47 }
 0x313   :  { %v852_v51 = vpop.f32.mrf.mxu0 }
 0x314   :  { %v853_v54 = vadd.f32 %v2365_v18, %v852_v51 }
 0x315   :  { %v1058_v53 = vpop.f32.mrf.mxu1 }
 0x316   :  { %v916_v37 = vmax.f32 %v853_v54, 0.0  ;;  %v1059_v45 = vadd.f32 %v2435_v52, %v1058_v53 }
 0x318   :  { %v1154_v50 = vmax.f32 %v1059_v45, 0.0  ;;  %1524 = vmatmul.msk.f32.gmra.mxu1 %vm944_vm1, %v916_v37 }
 0x31a   :  { %1540 = vmatmul.msk.f32.vlgmr.msrb.gmra.mxu2 %vm944_vm1, %v1154_v50 }
 0x31b   :  { %v855_v36 = vpop.f32.mrf.mxu0 }
 0x31c   :  { %v856_v57 = vadd.f32 %v2365_v18, %v855_v36 }
 0x31d   :  { %v1061_v59 = vpop.f32.mrf.mxu1 }
 0x31e   :  { %v917_v22 = vmax.f32 %v856_v57, 0.0  ;;  %v1062_v55 = vadd.f32 %v2435_v52, %v1061_v59 }
 0x320   :  { %v1155_v61 = vmax.f32 %v1062_v55, 0.0  ;;  %1525 = vmatmul.msk.f32.gmra.mxu1 %vm944_vm1, %v917_v22 }
 0x322   :  { %1541 = vmatmul.msk.f32.gmra.mxu2 %vm944_vm1, %v1155_v61 }
 0x323   :  { %v858_v60 = vpop.f32.mrf.mxu0 }
 0x324   :  { %v859_v8 = vadd.f32 %v2365_v18, %v858_v60 }
 0x325   :  { %v1064_v0 = vpop.f32.mrf.mxu1 }
 0x326   :  { %v918_v1 = vmax.f32 %v859_v8, 0.0  ;;  %v1065_v2 = vadd.f32 %v2435_v52, %v1064_v0 }
 0x328   :  { %v1156_v40 = vmax.f32 %v1065_v2, 0.0  ;;  %1526 = vmatmul.msk.f32.gmra.mxu1 %vm944_vm1, %v918_v1 }
 0x32a   :  { %1542 = vmatmul.msk.f32.gmra.mxu2 %vm944_vm1, %v1156_v40 }
 0x32b   :  { %v861_v63 = vpop.f32.mrf.mxu0 }
 0x32c   :  { %v862_v41 = vadd.f32 %v2365_v18, %v861_v63 }
 0x32d   :  { %v1067_v42 = vpop.f32.mrf.mxu1 }
 0x32e   :  { %v919_v48 = vmax.f32 %v862_v41, 0.0  ;;  %v1068_v4 = vadd.f32 %v2435_v52, %v1067_v42 }
 0x330   :  { %v1157_v13 = vmax.f32 %v1068_v4, 0.0  ;;  %1527 = vmatmul.msk.f32.gmra.mxu1 %vm944_vm1, %v919_v48 }
 0x332   :  { %1543 = vmatmul.msk.f32.gmra.mxu2 %vm944_vm1, %v1157_v13 }
 0x333   :  { %v864_v29 = vpop.f32.mrf.mxu0 }
 0x334   :  { %v865_v5 = vadd.f32 %v2365_v18, %v864_v29 }
 0x335   :  { %v1070_v44 = vpop.f32.mrf.mxu1 }
 0x336   :  { %v920_v15 = vmax.f32 %v865_v5, 0.0  ;;  %v1071_v33 = vadd.f32 %v2435_v52, %v1070_v44 }
 0x338   :  { %v1158_v17 = vmax.f32 %v1071_v33, 0.0  ;;  %1528 = vmatmul.msk.f32.gmra.mxu1 %vm944_vm1, %v920_v15 }
 0x33a   :  { %1544 = vmatmul.msk.f32.gmra.mxu2 %vm944_vm1, %v1158_v17 }
 0x33b   :  { %v867_v3 = vpop.f32.mrf.mxu0 }
 0x33c   :  { %v868_v62 = vadd.f32 %v2365_v18, %v867_v3 }
 0x33d   :  { %v1073_v19 = vpop.f32.mrf.mxu1 }
 0x33e   :  { %v921_v7 = vmax.f32 %v868_v62, 0.0  ;;  %v1074_v34 = vadd.f32 %v2435_v52, %v1073_v19 }
 0x340   :  { %v1159_v46 = vmax.f32 %v1074_v34, 0.0  ;;  %1529 = vmatmul.msk.f32.gmra.mxu1 %vm944_vm1, %v921_v7 }
 0x342   :  { %1545 = vmatmul.msk.f32.gmra.mxu2 %vm944_vm1, %v1159_v46 }
 0x343   :  { %v870_v30 = vpop.f32.mrf.mxu0 }
 0x344   :  { %v871_v20 = vadd.f32 %v2365_v18, %v870_v30 }
 0x345   :  { %v1076_v6 = vpop.f32.mrf.mxu1 }
 0x346   :  { %v922_v23 = vmax.f32 %v871_v20, 0.0  ;;  %v1077_v24 = vadd.f32 %v2435_v52, %v1076_v6  ;;  %v2503_v20 = vld [vmem:[#allocation2 + $0x5] ss:$0 sm:$0xff] }
 0x348   :  { %v1160_v25 = vmax.f32 %v1077_v24, 0.0  ;;  %1530 = vmatmul.msk.f32.gmra.mxu1 %vm944_vm1, %v922_v23 }
 0x34a   :  { %1546 = vmatmul.msk.f32.gmra.mxu2 %vm944_vm1, %v1160_v25 }
 0x34b   :  { %v873_v35 = vpop.f32.mrf.mxu0 }
 0x34c   :  { %v874_v14 = vadd.f32 %v2365_v18, %v873_v35 }
 0x34d   :  { %v1079_v27 = vpop.f32.mrf.mxu1 }
 0x34e   :  { %v923_v28 = vmax.f32 %v874_v14, 0.0  ;;  %v1080_v56 = vadd.f32 %v2435_v52, %v1079_v27 }
 0x350   :  { %v1161_v9 = vmax.f32 %v1080_v56, 0.0  ;;  %1531 = vmatmul.msk.f32.gmra.mxu1 %vm944_vm1, %v923_v28 }
 0x352   :  { %1547 = vmatmul.msk.f32.gmra.mxu2 %vm944_vm1, %v1161_v9 }
 0x353   :  { %v876_v39 = vpop.f32.mrf.mxu0 }
 0x354   :  { %v877_v31 = vadd.f32 %v2365_v18, %v876_v39 }
 0x355   :  { %v1082_v10 = vpop.f32.mrf.mxu1 }
 0x356   :  { %v924_v32 = vmax.f32 %v877_v31, 0.0  ;;  %v1083_v58 = vadd.f32 %v2435_v52, %v1082_v10 }
 0x358   :  { %v1162_v21 = vmax.f32 %v1083_v58, 0.0  ;;  %1532 = vmatmul.msk.f32.gmra.mxu1 %vm944_vm1, %v924_v32 }
 0x35a   :  { %1548 = vmatmul.msk.f32.gmra.mxu2 %vm944_vm1, %v1162_v21 }
 0x35b   :  { %v879_v16 = vpop.f32.mrf.mxu0 }
 0x35c   :  { %v880_v43 = vadd.f32 %v2365_v18, %v879_v16 }
 0x35d   :  { %v1085_v11 = vpop.f32.mrf.mxu1 }
 0x35e   :  { %v925_v38 = vmax.f32 %v880_v43, 0.0  ;;  %v1086_v12 = vadd.f32 %v2435_v52, %v1085_v11 }
 0x360   :  { %v1163_v49 = vmax.f32 %v1086_v12, 0.0  ;;  %1533 = vmatmul.msk.f32.gmra.mxu1 %vm944_vm1, %v925_v38 }
 0x362   :  { %1549 = vmatmul.msk.f32.gmra.mxu2 %vm944_vm1, %v1163_v49 }
 0x363   :  { %v882_v26 = vpop.f32.mrf.mxu0 }
 0x364   :  { %v883_v47 = vadd.f32 %v2365_v18, %v882_v26 }
 0x365   :  { %v1088_v51 = vpop.f32.mrf.mxu1 }
 0x366   :  { %v926_v54 = vmax.f32 %v883_v47, 0.0  ;;  %v1089_v53 = vadd.f32 %v2435_v52, %v1088_v51 }
 0x368   :  { %v1164_v37 = vmax.f32 %v1089_v53, 0.0  ;;  %1534 = vmatmul.msk.f32.gmra.mxu1 %vm944_vm1, %v926_v54 }
 0x36a   :  { %1550 = vmatmul.msk.f32.gmra.mxu2 %vm944_vm1, %v1164_v37 }
 0x36b   :  { %v885_v45 = vpop.f32.mrf.mxu0 }
 0x36c   :  { %v886_v50 = vadd.f32 %v2365_v18, %v885_v45 }
 0x36d   :  { %v1091_v36 = vpop.f32.mrf.mxu1 }
 0x36e   :  { %v927_v57 = vmax.f32 %v886_v50, 0.0  ;;  %v1092_v59 = vadd.f32 %v2435_v52, %v1091_v36 }
 0x370   :  { %v1165_v22 = vmax.f32 %v1092_v59, 0.0  ;;  %1535 = vmatmul.msk.f32.gmra.mxu1 %vm944_vm1, %v927_v57 }
 0x372   :  { %1551 = vmatmul.msk.f32.gmra.mxu2 %vm944_vm1, %v1165_v22 }
 0x373   :  { %v888_v55 = vpop.f32.mrf.mxu0 }
 0x374   :  { %v889_v61 = vadd.f32 %v2365_v18, %v888_v55 }
 0x375   :  { %v1094_v60 = vpop.f32.mrf.mxu1 }
 0x376   :  { %v928_v8 = vmax.f32 %v889_v61, 0.0  ;;  %v1095_v0 = vadd.f32 %v2435_v52, %v1094_v60 }
 0x378   :  { %v1166_v1 = vmax.f32 %v1095_v0, 0.0  ;;  %1536 = vmatmul.msk.f32.gmra.mxu1 %vm944_vm1, %v928_v8 }
 0x37a   :  { %1552 = vmatmul.msk.f32.gmra.mxu2 %vm944_vm1, %v1166_v1 }
 0x37b   :  { %v891_v2 = vpop.f32.mrf.mxu0 }
 0x37c   :  { %v892_v40 = vadd.f32 %v2365_v18, %v891_v2 }
 0x37d   :  { %v1097_v63 = vpop.f32.mrf.mxu1 }
 0x37e   :  { %v929_v41 = vmax.f32 %v892_v40, 0.0  ;;  %v1098_v42 = vadd.f32 %v2435_v52, %v1097_v63 }
 0x380   :  { %v1167_v48 = vmax.f32 %v1098_v42, 0.0  ;;  %1537 = vmatmul.msk.f32.gmra.mxu1 %vm944_vm1, %v929_v41 }
 0x382   :  { %1553 = vmatmul.msk.f32.gmra.mxu2 %vm944_vm1, %v1167_v48 }
 0x383   :  { %v894_v4 = vpop.f32.mrf.mxu0 }
 0x384   :  { %v895_v13 = vadd.f32 %v2365_v18, %v894_v4 }
 0x385   :  { %v1100_v29 = vpop.f32.mrf.mxu1 }
 0x386   :  { %v930_v5 = vmax.f32 %v895_v13, 0.0  ;;  %v1101_v44 = vadd.f32 %v2435_v52, %v1100_v29 }
 0x388   :  { %v1168_v15 = vmax.f32 %v1101_v44, 0.0  ;;  %1538 = vmatmul.msk.f32.gmra.mxu1 %vm944_vm1, %v930_v5 }
 0x38a   :  { %1554 = vmatmul.msk.f32.gmra.mxu2 %vm944_vm1, %v1168_v15 }
 0x38b   :  { %v897_v33 = vpop.f32.mrf.mxu0 }
 0x38c   :  { %v898_v17 = vadd.f32 %v2365_v18, %v897_v33 }
 0x38d   :  { %v1103_v3 = vpop.f32.mrf.mxu1 }
 0x38e   :  { %v931_v62 = vmax.f32 %v898_v17, 0.0  ;;  %v1104_v19 = vadd.f32 %v2435_v52, %v1103_v3 }
 0x390   :  { %v1169_v7 = vmax.f32 %v1104_v19, 0.0  ;;  %1539 = vmatmul.msk.f32.gmra.mxu1 %vm944_vm1, %v931_v62 }
 0x392   :  { %1555 = vmatmul.msk.f32.gmra.mxu2 %vm944_vm1, %v1169_v7 }
 0x395   :  { %v1106_v34 = vpop.f32.mrf.mxu1 }
 0x396   :  { %v1107_v46 = vadd.f32 %v2435_v52, %v1106_v34 }
 0x398   :  { %v1170_v30 = vmax.f32 %v1107_v46, 0.0 }
 0x39a   :  { %1556 = vmatmul.msk.f32.gmra.mxu2 %vm944_vm1, %v1170_v30 }
 0x39d   :  { %v1109_v6 = vpop.f32.mrf.mxu1  ;;  %v1311_v23 = vpop.f32.mrf.mxu2 }
 0x39e   :  { %v1110_v18 = vadd.f32 %v2435_v52, %v1109_v6  ;;  %v1312_v24 = vadd.f32 %v2503_v20, %v1311_v23 }
 0x3a0   :  { %v1171_v25 = vmax.f32 %v1110_v18, 0.0  ;;  %1407 = vst [vmem:[%s2670_s7] sm:$0xff] %v1312_v24 }
 0x3a2   :  { %1557 = vmatmul.msk.f32.gmra.mxu2 %vm944_vm1, %v1171_v25 }
 0x3a5   :  { %v1112_v35 = vpop.f32.mrf.mxu1  ;;  %v1314_v14 = vpop.f32.mrf.mxu2 }
 0x3a6   :  { %v1113_v27 = vadd.f32 %v2435_v52, %v1112_v35  ;;  %v1315_v28 = vadd.f32 %v2503_v20, %v1314_v14 }
 0x3a8   :  { %v1172_v56 = vmax.f32 %v1113_v27, 0.0  ;;  %1408 = vst [vmem:[%s2670_s7 + $0x8] sm:$0xff] %v1315_v28 }
 0x3aa   :  { %1558 = vmatmul.msk.f32.gmra.mxu2 %vm944_vm1, %v1172_v56 }
 0x3ad   :  { %v1115_v9 = vpop.f32.mrf.mxu1  ;;  %v1317_v39 = vpop.f32.mrf.mxu2 }
 0x3ae   :  { %v1116_v31 = vadd.f32 %v2435_v52, %v1115_v9  ;;  %v1318_v10 = vadd.f32 %v2503_v20, %v1317_v39 }
 0x3b0   :  { %v1173_v32 = vmax.f32 %v1116_v31, 0.0  ;;  %1409 = vst [vmem:[%s2670_s7 + $0x10] sm:$0xff] %v1318_v10 }
 0x3b2   :  { %1559 = vmatmul.msk.f32.gmra.mxu2 %vm944_vm1, %v1173_v32 }
 0x3b5   :  { %v1118_v58 = vpop.f32.mrf.mxu1  ;;  %v1320_v21 = vpop.f32.mrf.mxu2 }
 0x3b6   :  { %v1119_v16 = vadd.f32 %v2435_v52, %v1118_v58  ;;  %v1321_v43 = vadd.f32 %v2503_v20, %v1320_v21 }
 0x3b8   :  { %v1174_v11 = vmax.f32 %v1119_v16, 0.0  ;;  %1410 = vst [vmem:[%s2670_s7 + $0x18] sm:$0xff] %v1321_v43 }
 0x3ba   :  { %1560 = vmatmul.msk.f32.gmra.mxu2 %vm944_vm1, %v1174_v11 }
 0x3bd   :  { %v1121_v38 = vpop.f32.mrf.mxu1  ;;  %v1323_v12 = vpop.f32.mrf.mxu2 }
 0x3be   :  { %v1122_v49 = vadd.f32 %v2435_v52, %v1121_v38  ;;  %v1324_v26 = vadd.f32 %v2503_v20, %v1323_v12 }
 0x3c0   :  { %v1175_v47 = vmax.f32 %v1122_v49, 0.0  ;;  %1411 = vst [vmem:[%s2670_s7 + $0x20] sm:$0xff] %v1324_v26 }
 0x3c2   :  { %1561 = vmatmul.msk.f32.gmra.mxu2 %vm944_vm1, %v1175_v47 }
 0x3c5   :  { %v1124_v51 = vpop.f32.mrf.mxu1  ;;  %v1326_v54 = vpop.f32.mrf.mxu2 }
 0x3c6   :  { %v1125_v53 = vadd.f32 %v2435_v52, %v1124_v51  ;;  %v1327_v37 = vadd.f32 %v2503_v20, %v1326_v54 }
 0x3c8   :  { %v1176_v45 = vmax.f32 %v1125_v53, 0.0  ;;  %1412 = vst [vmem:[%s2670_s7 + $0x28] sm:$0xff] %v1327_v37 }
 0x3ca   :  { %1562 = vmatmul.msk.f32.gmra.mxu2 %vm944_vm1, %v1176_v45 }
 0x3cd   :  { %v1127_v50 = vpop.f32.mrf.mxu1  ;;  %v1329_v36 = vpop.f32.mrf.mxu2 }
 0x3ce   :  { %v1128_v57 = vadd.f32 %v2435_v52, %v1127_v50  ;;  %v1330_v59 = vadd.f32 %v2503_v20, %v1329_v36 }
 0x3d0   :  { %v1177_v22 = vmax.f32 %v1128_v57, 0.0  ;;  %1413 = vst [vmem:[%s2670_s7 + $0x30] sm:$0xff] %v1330_v59 }
 0x3d2   :  { %1563 = vmatmul.msk.f32.gmra.mxu2 %vm944_vm1, %v1177_v22 }
 0x3d5   :  { %v1130_v55 = vpop.f32.mrf.mxu1  ;;  %v1332_v61 = vpop.f32.mrf.mxu2 }
 0x3d6   :  { %v1131_v60 = vadd.f32 %v2435_v52, %v1130_v55  ;;  %v1333_v8 = vadd.f32 %v2503_v20, %v1332_v61 }
 0x3d8   :  { %v1178_v0 = vmax.f32 %v1131_v60, 0.0  ;;  %1414 = vst [vmem:[%s2670_s7 + $0x38] sm:$0xff] %v1333_v8 }
 0x3da   :  { %1564 = vmatmul.msk.f32.gmra.mxu2 %vm944_vm1, %v1178_v0 }
 0x3dd   :  { %v1133_v1 = vpop.f32.mrf.mxu1  ;;  %v1335_v2 = vpop.f32.mrf.mxu2 }
 0x3de   :  { %v1134_v40 = vadd.f32 %v2435_v52, %v1133_v1  ;;  %v1336_v63 = vadd.f32 %v2503_v20, %v1335_v2 }
 0x3e0   :  { %v1179_v41 = vmax.f32 %v1134_v40, 0.0  ;;  %1415 = vst [vmem:[%s2670_s7 + $0x40] sm:$0xff] %v1336_v63 }
 0x3e2   :  { %1565 = vmatmul.msk.f32.gmra.mxu2 %vm944_vm1, %v1179_v41 }
 0x3e5   :  { %v1136_v42 = vpop.f32.mrf.mxu1  ;;  %v1338_v48 = vpop.f32.mrf.mxu2 }
 0x3e6   :  { %v1137_v4 = vadd.f32 %v2435_v52, %v1136_v42  ;;  %v1339_v13 = vadd.f32 %v2503_v20, %v1338_v48 }
 0x3e8   :  { %v1180_v29 = vmax.f32 %v1137_v4, 0.0  ;;  %1416 = vst [vmem:[%s2670_s7 + $0x48] sm:$0xff] %v1339_v13 }
 0x3ea   :  { %1566 = vmatmul.msk.f32.gmra.mxu2 %vm944_vm1, %v1180_v29 }
 0x3ed   :  { %v1139_v5 = vpop.f32.mrf.mxu1  ;;  %v1341_v44 = vpop.f32.mrf.mxu2 }
 0x3ee   :  { %v1140_v15 = vadd.f32 %v2435_v52, %v1139_v5  ;;  %v1342_v33 = vadd.f32 %v2503_v20, %v1341_v44 }
 0x3f0   :  { %v1181_v17 = vmax.f32 %v1140_v15, 0.0  ;;  %1417 = vst [vmem:[%s2670_s7 + $0x50] sm:$0xff] %v1342_v33 }
 0x3f2   :  { %1567 = vmatmul.msk.f32.gmra.mxu2 %vm944_vm1, %v1181_v17 }
 0x3f5   :  { %v1142_v3 = vpop.f32.mrf.mxu1  ;;  %v1344_v62 = vpop.f32.mrf.mxu2 }
 0x3f6   :  { %v1143_v19 = vadd.f32 %v2435_v52, %v1142_v3  ;;  %v1345_v7 = vadd.f32 %v2503_v20, %v1344_v62 }
 0x3f8   :  { %v1182_v34 = vmax.f32 %v1143_v19, 0.0  ;;  %1418 = vst [vmem:[%s2670_s7 + $0x58] sm:$0xff] %v1345_v7 }
 0x3fa   :  { %1568 = vmatmul.msk.f32.gmra.mxu2 %vm944_vm1, %v1182_v34 }
 0x3fd   :  { %v1145_v46 = vpop.f32.mrf.mxu1  ;;  %v1347_v30 = vpop.f32.mrf.mxu2 }
 0x3fe   :  { %v1146_v6 = vadd.f32 %v2435_v52, %v1145_v46  ;;  %v1348_v23 = vadd.f32 %v2503_v20, %v1347_v30 }
 0x400   :  { %v1183_v18 = vmax.f32 %v1146_v6, 0.0  ;;  %1419 = vst [vmem:[%s2670_s7 + $0x60] sm:$0xff] %v1348_v23 }
 0x402   :  { %1569 = vmatmul.msk.f32.gmra.mxu2 %vm944_vm1, %v1183_v18 }
 0x405   :  { %v1148_v24 = vpop.f32.mrf.mxu1  ;;  %v1350_v25 = vpop.f32.mrf.mxu2 }
 0x406   :  { %v1149_v35 = vadd.f32 %v2435_v52, %v1148_v24  ;;  %v1351_v14 = vadd.f32 %v2503_v20, %v1350_v25 }
 0x408   :  { %v1184_v27 = vmax.f32 %v1149_v35, 0.0  ;;  %1420 = vst [vmem:[%s2670_s7 + $0x68] sm:$0xff] %v1351_v14 }
 0x40a   :  { %1570 = vmatmul.msk.f32.gmra.mxu2 %vm944_vm1, %v1184_v27 }
 0x40d   :  { %v1151_v28 = vpop.f32.mrf.mxu1  ;;  %v1353_v56 = vpop.f32.mrf.mxu2 }
 0x40e   :  { %v1152_v9 = vadd.f32 %v2435_v52, %v1151_v28  ;;  %v1354_v39 = vadd.f32 %v2503_v20, %v1353_v56 }
 0x410   :  { %v1185_v31 = vmax.f32 %v1152_v9, 0.0  ;;  %1421 = vst [vmem:[%s2670_s7 + $0x70] sm:$0xff] %v1354_v39 }
 0x412   :  { %1571 = vmatmul.msk.f32.vlgmr.msra.gmra.mxu3 %vm944_vm1, %v1185_v31 }
 0x415   :  { %v1356_v10 = vpop.f32.mrf.mxu2 }
 0x416   :  { %v1357_v32 = vadd.f32 %v2503_v20, %v1356_v10 }
 0x418   :  { %1422 = vst [vmem:[%s2670_s7 + $0x78] sm:$0xff] %v1357_v32 }
 0x41d   :  { %v1359_v58 = vpop.f32.mrf.mxu2 }
 0x41e   :  { %v1360_v21 = vadd.f32 %v2503_v20, %v1359_v58 }
 0x420   :  { %1423 = vst [vmem:[%s2670_s7 + $0x80] sm:$0xff] %v1360_v21 }
 0x425   :  { %v1362_v52 = vpop.f32.mrf.mxu2 }
 0x426   :  { %v1363_v16 = vadd.f32 %v2503_v20, %v1362_v52 }
 0x428   :  { %1424 = vst [vmem:[%s2670_s7 + $0x88] sm:$0xff] %v1363_v16 }
 0x42d   :  { %v1365_v43 = vpop.f32.mrf.mxu2 }
 0x42e   :  { %v1366_v11 = vadd.f32 %v2503_v20, %v1365_v43 }
 0x430   :  { %1425 = vst [vmem:[%s2670_s7 + $0x90] sm:$0xff] %v1366_v11 }
 0x435   :  { %v1368_v38 = vpop.f32.mrf.mxu2 }
 0x436   :  { %v1369_v12 = vadd.f32 %v2503_v20, %v1368_v38 }
 0x438   :  { %1426 = vst [vmem:[%s2670_s7 + $0x98] sm:$0xff] %v1369_v12 }
 0x43d   :  { %v1371_v49 = vpop.f32.mrf.mxu2 }
 0x43e   :  { %v1372_v26 = vadd.f32 %v2503_v20, %v1371_v49 }
 0x440   :  { %1427 = vst [vmem:[%s2670_s7 + $0xa0] sm:$0xff] %v1372_v26 }
 0x445   :  { %v1374_v47 = vpop.f32.mrf.mxu2 }
 0x446   :  { %v1375_v51 = vadd.f32 %v2503_v20, %v1374_v47 }
 0x448   :  { %1428 = vst [vmem:[%s2670_s7 + $0xa8] sm:$0xff] %v1375_v51 }
 0x44d   :  { %v1377_v54 = vpop.f32.mrf.mxu2 }
 0x44e   :  { %v1378_v53 = vadd.f32 %v2503_v20, %v1377_v54 }
 0x450   :  { %1429 = vst [vmem:[%s2670_s7 + $0xb0] sm:$0xff] %v1378_v53 }
 0x455   :  { %v1380_v37 = vpop.f32.mrf.mxu2 }
 0x456   :  { %v1381_v45 = vadd.f32 %v2503_v20, %v1380_v37 }
 0x458   :  { %1430 = vst [vmem:[%s2670_s7 + $0xb8] sm:$0xff] %v1381_v45 }
 0x45d   :  { %v1383_v50 = vpop.f32.mrf.mxu2 }
 0x45e   :  { %v1384_v36 = vadd.f32 %v2503_v20, %v1383_v50 }
 0x460   :  { %1431 = vst [vmem:[%s2670_s7 + $0xc0] sm:$0xff] %v1384_v36 }
 0x465   :  { %v1386_v57 = vpop.f32.mrf.mxu2 }
 0x466   :  { %v1387_v59 = vadd.f32 %v2503_v20, %v1386_v57 }
 0x468   :  { %1432 = vst [vmem:[%s2670_s7 + $0xc8] sm:$0xff] %v1387_v59 }
 0x46d   :  { %v1389_v22 = vpop.f32.mrf.mxu2 }
 0x46e   :  { %v1390_v55 = vadd.f32 %v2503_v20, %v1389_v22 }
 0x470   :  { %1433 = vst [vmem:[%s2670_s7 + $0xd0] sm:$0xff] %v1390_v55 }
 0x475   :  { %v1392_v61 = vpop.f32.mrf.mxu2 }
 0x476   :  { %v1393_v60 = vadd.f32 %v2503_v20, %v1392_v61 }
 0x478   :  { %1434 = vst [vmem:[%s2670_s7 + $0xd8] sm:$0xff] %v1393_v60 }
 0x47d   :  { %v1395_v8 = vpop.f32.mrf.mxu2 }
 0x47e   :  { %v1396_v0 = vadd.f32 %v2503_v20, %v1395_v8 }
 0x480   :  { %1435 = vst [vmem:[%s2670_s7 + $0xe0] sm:$0xff] %v1396_v0 }
 0x485   :  { %v1398_v1 = vpop.f32.mrf.mxu2 }
 0x486   :  { %v1399_v2 = vadd.f32 %v2503_v20, %v1398_v1 }
 0x488   :  { %1436 = vst [vmem:[%s2670_s7 + $0xe8] sm:$0xff] %v1399_v2 }
 0x48d   :  { %v1401_v40 = vpop.f32.mrf.mxu2 }
 0x48e   :  { %v1402_v63 = vadd.f32 %v2503_v20, %v1401_v40 }
 0x490   :  { %1437 = vst [vmem:[%s2670_s7 + $0xf0] sm:$0xff] %v1402_v63 }
 0x495   :  { %v1404_v41 = vpop.f32.mrf.mxu3 }
 0x496   :  { %v1405_v42 = vadd.f32 %v2503_v20, %v1404_v41 }
 0x498   :  { %1438 = vst [vmem:[%s2670_s7 + $0xf8] sm:$0xff] %v1405_v42 }
 0x499   :  { %1443 = vsyncpa [#allocation3], 1 }

</bundles_post_ra>
